<compile_context>
chip_gen: v6e
topology: v6e:2x2x1
jax: 0.10.0
libtpu: 0.0.40
codegen_flags: <defaults>
</compile_context>

<pallas_src>
import numpy as np
import jax
import jax.numpy as jnp
from jax.experimental import pallas as pl
from jax.experimental.pallas import tpu as pltpu

# ----- model dims (module defaults) -----
LATENT = 32          # latent_dim
SEQ = 22             # seq_length
NUC = 5              # n_nucleotides
HID = 64             # hidden_dim (channels after fc2 reshape)
MID = 32             # upsample1 out channels
FC1 = 256            # fc1 out features
B = 2                # batch


# ---------------- fused kernel ----------------
# Operands (all whole-array VMEM, no grid):
#   z_ref  : (B, LATENT)            f32
#   w1_ref : (LATENT+1, FC1)        bf16   rows [W1 ; b1]
#   w2_ref : (FC1+1, SEQ*HID)       bf16   rows [W2 (channel-last permuted) ; b2]
#   c1_ref : (3*HID+1, MID)         f32    rows [tap(t-1) ; tap(t) ; tap(t+1) ; bias]
#   c2_ref : (3*MID+1, NUC)         f32    rows [tap(t-1) ; tap(t) ; tap(t+1) ; bias]
#   out_ref: (B*SEQ, NUC)           f32    time-major rows (row = t*B + b)
#   x_scr  : (B*SEQ, HID)           f32    VMEM scratch for the relayout
def _build_decoder_kernel(bsz):
    n = bsz * SEQ                      # flat time-major row count

    def kernel(z_ref, w1_ref, w2_ref, c1_ref, c2_ref, out_ref, x_scr):
        # ---- MLP: relu(fc1) -> relu(fc2)  (bf16 weights, f32 accumulation) ----
        z = z_ref[...].astype(jnp.bfloat16)
        h1 = jnp.dot(z, w1_ref[0:LATENT, :], preferred_element_type=jnp.float32)
        h1 = h1 + w1_ref[LATENT:LATENT + 1, :].astype(jnp.float32)
        h1 = jnp.maximum(h1, 0.0)

        h2 = jnp.dot(h1.astype(jnp.bfloat16), w2_ref[0:FC1, :],
                     preferred_element_type=jnp.float32)
        h2 = h2 + w2_ref[FC1:FC1 + 1, :].astype(jnp.float32)
        h2 = jnp.maximum(h2, 0.0)                  # (bsz, SEQ*HID), channel-last cols

        # ---- relayout (bsz, SEQ*HID) -> time-major (SEQ*bsz, HID) via static copies ----
        for t in range(SEQ):
            x_scr[t * bsz:(t + 1) * bsz, :] = h2[:, t * HID:(t + 1) * HID]
        x = x_scr[...]                             # (n, HID) f32

        # time-major boundary masks: first bsz rows have no t-1, last bsz rows no t+1
        row = jax.lax.broadcasted_iota(jnp.int32, (n, 1), 0)
        has_prev = row >= bsz
        has_next = row < (n - bsz)

        # ---- ConvTranspose1d(k=3, s=1, p=1) as three accumulated MXU dots ----
        def convt(v, w_ref, cin):
            vprev = jnp.where(has_prev, pltpu.roll(v, shift=bsz, axis=0), 0.0)
            vnext = jnp.where(has_next, pltpu.roll(v, shift=n - bsz, axis=0), 0.0)
            y = jnp.dot(vprev, w_ref[0:cin, :], preferred_element_type=jnp.float32)
            y = y + jnp.dot(v, w_ref[cin:2 * cin, :],
                            preferred_element_type=jnp.float32)
            y = y + jnp.dot(vnext, w_ref[2 * cin:3 * cin, :],
                            preferred_element_type=jnp.float32)
            return y + w_ref[3 * cin:3 * cin + 1, :]

        y1 = jnp.maximum(convt(x, c1_ref, HID), 0.0)       # (n, MID)
        logits = convt(y1, c2_ref, MID)                    # (n, NUC)

        # ---- softmax over nucleotides (last dim) ----
        m = jnp.max(logits, axis=-1, keepdims=True)
        e = jnp.exp(logits - m)
        inv = pl.reciprocal(jnp.sum(e, axis=-1, keepdims=True), approx=False)
        out_ref[...] = e * inv

    return kernel


# ---------------- one-time host-side parameter preparation ----------------
def prepare_params(p):
    # fc1: pack [W1 ; b1], downcast to bf16 (MXU bf16 path, half the weight traffic).
    w1p = jnp.concatenate([p["w1"], p["b1"].reshape(1, FC1)],
                          axis=0).astype(jnp.bfloat16)

    # fc2: permute columns so output index is t*HID + c (channel-last) instead of
    # c*SEQ + t, pack bias, downcast to bf16.
    w2 = p["w2"].reshape(FC1, HID, SEQ).transpose(0, 2, 1).reshape(FC1, SEQ * HID)
    b2 = p["b2"].reshape(HID, SEQ).T.reshape(1, SEQ * HID)
    w2p = jnp.concatenate([w2, b2], axis=0).astype(jnp.bfloat16)

    # ConvTranspose1d weight (Cin, Cout, 3): tap order [prev | cur | next] corresponds
    # to kernel taps [k=2 | k=1 | k=0]; bias appended as the last row.  Kept f32 (tiny).
    def conv_pack(w, b):
        return jnp.concatenate([w[:, :, 2], w[:, :, 1], w[:, :, 0],
                                b.reshape(1, -1)], axis=0)

    return {"w1p": w1p, "w2p": w2p,
            "c1p": conv_pack(p["cw1"], p["cb1"]),
            "c2p": conv_pack(p["cw2"], p["cb2"])}


# ---------------- forward ----------------
def decoder_forward(z, pp):
    bsz = z.shape[0]
    n = bsz * SEQ

    out_tm = pl.pallas_call(
        _build_decoder_kernel(bsz),
        out_shape=jax.ShapeDtypeStruct((n, NUC), jnp.float32),
        in_specs=[pl.BlockSpec(memory_space=pltpu.MemorySpace.VMEM)] * 5,
        out_specs=pl.BlockSpec(memory_space=pltpu.MemorySpace.VMEM),
        scratch_shapes=[pltpu.VMEM((n, HID), jnp.float32)],
    )(z, pp["w1p"], pp["w2p"], pp["c1p"], pp["c2p"])

    # time-major (SEQ, bsz) -> batch-major (bsz, SEQ): free reshape + tiny transpose
    return out_tm.reshape(SEQ, bsz, NUC).transpose(1, 0, 2)


decoder_forward_jit = jax.jit(decoder_forward)


# ---------------- pure-JAX reference (PyTorch semantics) ----------------
def _convT_ref(x, w, b):
    # x: (B, Cin, T), w: (Cin, Cout, 3), b: (Cout,); stride=1, padding=1
    T = x.shape[2]
    xp = jnp.pad(x, ((0, 0), (0, 0), (1, 1)))
    y = sum(jnp.einsum("bit,io->bot", xp[:, :, 2 - j:2 - j + T], w[:, :, j])
            for j in range(3))
    return y + b[None, :, None]


def ref_forward(z, p):
    h1 = jax.nn.relu(z @ p["w1"] + p["b1"])
    h2 = jax.nn.relu(h1 @ p["w2"] + p["b2"])
    x = h2.reshape(-1, HID, SEQ)
    y1 = jax.nn.relu(_convT_ref(x, p["cw1"], p["cb1"]))
    y2 = _convT_ref(y1, p["cw2"], p["cb2"])
    return jax.nn.softmax(jnp.transpose(y2, (0, 2, 1)), axis=2)


if __name__ == "__main__":
    key = jax.random.PRNGKey(0)
    ks = jax.random.split(key, 9)
    s = 0.1
    params = {
        # Linear weights stored as (in, out) (transposed vs nn.Linear storage)
        "w1": jax.random.normal(ks[0], (LATENT, FC1), jnp.float32) * s,
        "b1": jax.random.normal(ks[1], (FC1,), jnp.float32) * s,
        "w2": jax.random.normal(ks[2], (FC1, SEQ * HID), jnp.float32) * s,
        "b2": jax.random.normal(ks[3], (SEQ * HID,), jnp.float32) * s,
        # ConvTranspose1d weights, PyTorch shape (in_channels, out_channels, k)
        "cw1": jax.random.normal(ks[4], (HID, MID, 3), jnp.float32) * s,
        "cb1": jax.random.normal(ks[5], (MID,), jnp.float32) * s,
        "cw2": jax.random.normal(ks[6], (MID, NUC, 3), jnp.float32) * s,
        "cb2": jax.random.normal(ks[7], (NUC,), jnp.float32) * s,
    }
    z = jax.random.normal(ks[8], (B, LATENT), jnp.float32)

    pp = prepare_params(params)              # one-time weight re-layout / bf16 cast

    out = jax.block_until_ready(decoder_forward_jit(z, pp))
    ref = jax.block_until_ready(ref_forward(z, params))

    assert out.shape == (B, SEQ, NUC), out.shape
    # bf16 weights in the MXU path -> tolerance relaxed per the review's guidance
    assert np.allclose(np.asarray(out), np.asarray(ref), atol=2e-2, rtol=2e-2), (
        "mismatch vs reference")
    # probabilities still sum to 1 across nucleotides
    assert np.allclose(np.asarray(out).sum(-1), 1.0, atol=1e-4)

    print("KERNEL_OK")
</pallas_src>

<mosaic_0001>
module attributes {stable_mosaic.version = 11 : i64} {
  func.func @kernel(%arg0: memref<2x32xf32, #tpu.memory_space<vmem>>, %arg1: memref<33x256xbf16, #tpu.memory_space<vmem>>, %arg2: memref<257x1408xbf16, #tpu.memory_space<vmem>>, %arg3: memref<193x32xf32, #tpu.memory_space<vmem>>, %arg4: memref<97x5xf32, #tpu.memory_space<vmem>>, %arg5: memref<44x5xf32, #tpu.memory_space<vmem>>, %arg6: memref<44x64xf32, #tpu.memory_space<vmem>>) attributes {dimension_semantics = [], scalar_prefetch = 0 : i64, scratch_operands = 1 : i64, tpu.core_type = #tpu.core_type<tc>} {
    %c0 = arith.constant 0 : index
    %c0_0 = arith.constant 0 : index
    %0 = vector.load %arg0[%c0, %c0_0] : memref<2x32xf32, #tpu.memory_space<vmem>>, vector<2x32xf32>
    %1 = arith.truncf %0 : vector<2x32xf32> to vector<2x32xbf16>
    %c0_1 = arith.constant 0 : index
    %c0_2 = arith.constant 0 : index
    %2 = vector.load %arg1[%c0_1, %c0_2] : memref<33x256xbf16, #tpu.memory_space<vmem>>, vector<32x256xbf16>
    %cst = arith.constant dense<0.000000e+00> : vector<2x256xf32>
    %3 = tpu.matmul %1, %2, %cst {dimension_numbers = #tpu.dot_dimension_numbers<[1], [0], [0], [1], [0, 0, 1, 1], [], []>} : vector<2x32xbf16>, vector<32x256xbf16>, vector<2x256xf32> -> vector<2x256xf32>
    %c32 = arith.constant 32 : index
    %c0_3 = arith.constant 0 : index
    %4 = vector.load %arg1[%c32, %c0_3] : memref<33x256xbf16, #tpu.memory_space<vmem>>, vector<1x256xbf16>
    %5 = arith.extf %4 : vector<1x256xbf16> to vector<1x256xf32>
    %6 = vector.broadcast %5 : vector<1x256xf32> to vector<2x256xf32>
    %7 = arith.addf %3, %6 : vector<2x256xf32>
    %cst_4 = arith.constant 0.000000e+00 : f32
    %8 = vector.broadcast %cst_4 : f32 to vector<2x256xf32>
    %9 = arith.maximumf %7, %8 : vector<2x256xf32>
    %10 = arith.truncf %9 : vector<2x256xf32> to vector<2x256xbf16>
    %c0_5 = arith.constant 0 : index
    %c0_6 = arith.constant 0 : index
    %11 = vector.load %arg2[%c0_5, %c0_6] : memref<257x1408xbf16, #tpu.memory_space<vmem>>, vector<256x1408xbf16>
    %cst_7 = arith.constant dense<0.000000e+00> : vector<2x1408xf32>
    %12 = tpu.matmul %10, %11, %cst_7 {dimension_numbers = #tpu.dot_dimension_numbers<[1], [0], [0], [1], [0, 0, 1, 1], [], []>} : vector<2x256xbf16>, vector<256x1408xbf16>, vector<2x1408xf32> -> vector<2x1408xf32>
    %c256 = arith.constant 256 : index
    %c0_8 = arith.constant 0 : index
    %13 = vector.load %arg2[%c256, %c0_8] : memref<257x1408xbf16, #tpu.memory_space<vmem>>, vector<1x1408xbf16>
    %14 = arith.extf %13 : vector<1x1408xbf16> to vector<1x1408xf32>
    %15 = vector.broadcast %14 : vector<1x1408xf32> to vector<2x1408xf32>
    %16 = arith.addf %12, %15 : vector<2x1408xf32>
    %cst_9 = arith.constant 0.000000e+00 : f32
    %17 = vector.broadcast %cst_9 : f32 to vector<2x1408xf32>
    %18 = arith.maximumf %16, %17 : vector<2x1408xf32>
    %19 = vector.extract_strided_slice %18 {offsets = [0, 0], sizes = [2, 64], strides = [1, 1]} : vector<2x1408xf32> to vector<2x64xf32>
    %c0_10 = arith.constant 0 : index
    %c0_11 = arith.constant 0 : index
    %20 = vector.load %arg6[%c0_10, %c0_11] : memref<44x64xf32, #tpu.memory_space<vmem>>, vector<2x64xf32>
    tpu.vector_store %arg6[%c0_10, %c0_11], %19 {strides = array<i32>} : memref<44x64xf32, #tpu.memory_space<vmem>>, vector<2x64xf32>,
    %21 = vector.extract_strided_slice %18 {offsets = [0, 64], sizes = [2, 64], strides = [1, 1]} : vector<2x1408xf32> to vector<2x64xf32>
    %c2 = arith.constant 2 : index
    %c0_12 = arith.constant 0 : index
    %22 = vector.load %arg6[%c2, %c0_12] : memref<44x64xf32, #tpu.memory_space<vmem>>, vector<2x64xf32>
    tpu.vector_store %arg6[%c2, %c0_12], %21 {strides = array<i32>} : memref<44x64xf32, #tpu.memory_space<vmem>>, vector<2x64xf32>,
    %23 = vector.extract_strided_slice %18 {offsets = [0, 128], sizes = [2, 64], strides = [1, 1]} : vector<2x1408xf32> to vector<2x64xf32>
    %c4 = arith.constant 4 : index
    %c0_13 = arith.constant 0 : index
    %24 = vector.load %arg6[%c4, %c0_13] : memref<44x64xf32, #tpu.memory_space<vmem>>, vector<2x64xf32>
    tpu.vector_store %arg6[%c4, %c0_13], %23 {strides = array<i32>} : memref<44x64xf32, #tpu.memory_space<vmem>>, vector<2x64xf32>,
    %25 = vector.extract_strided_slice %18 {offsets = [0, 192], sizes = [2, 64], strides = [1, 1]} : vector<2x1408xf32> to vector<2x64xf32>
    %c6 = arith.constant 6 : index
    %c0_14 = arith.constant 0 : index
    %26 = vector.load %arg6[%c6, %c0_14] : memref<44x64xf32, #tpu.memory_space<vmem>>, vector<2x64xf32>
    tpu.vector_store %arg6[%c6, %c0_14], %25 {strides = array<i32>} : memref<44x64xf32, #tpu.memory_space<vmem>>, vector<2x64xf32>,
    %27 = vector.extract_strided_slice %18 {offsets = [0, 256], sizes = [2, 64], strides = [1, 1]} : vector<2x1408xf32> to vector<2x64xf32>
    %c8 = arith.constant 8 : index
    %c0_15 = arith.constant 0 : index
    %28 = vector.load %arg6[%c8, %c0_15] : memref<44x64xf32, #tpu.memory_space<vmem>>, vector<2x64xf32>
    tpu.vector_store %arg6[%c8, %c0_15], %27 {strides = array<i32>} : memref<44x64xf32, #tpu.memory_space<vmem>>, vector<2x64xf32>,
    %29 = vector.extract_strided_slice %18 {offsets = [0, 320], sizes = [2, 64], strides = [1, 1]} : vector<2x1408xf32> to vector<2x64xf32>
    %c10 = arith.constant 10 : index
    %c0_16 = arith.constant 0 : index
    %30 = vector.load %arg6[%c10, %c0_16] : memref<44x64xf32, #tpu.memory_space<vmem>>, vector<2x64xf32>
    tpu.vector_store %arg6[%c10, %c0_16], %29 {strides = array<i32>} : memref<44x64xf32, #tpu.memory_space<vmem>>, vector<2x64xf32>,
    %31 = vector.extract_strided_slice %18 {offsets = [0, 384], sizes = [2, 64], strides = [1, 1]} : vector<2x1408xf32> to vector<2x64xf32>
    %c12 = arith.constant 12 : index
    %c0_17 = arith.constant 0 : index
    %32 = vector.load %arg6[%c12, %c0_17] : memref<44x64xf32, #tpu.memory_space<vmem>>, vector<2x64xf32>
    tpu.vector_store %arg6[%c12, %c0_17], %31 {strides = array<i32>} : memref<44x64xf32, #tpu.memory_space<vmem>>, vector<2x64xf32>,
    %33 = vector.extract_strided_slice %18 {offsets = [0, 448], sizes = [2, 64], strides = [1, 1]} : vector<2x1408xf32> to vector<2x64xf32>
    %c14 = arith.constant 14 : index
    %c0_18 = arith.constant 0 : index
    %34 = vector.load %arg6[%c14, %c0_18] : memref<44x64xf32, #tpu.memory_space<vmem>>, vector<2x64xf32>
    tpu.vector_store %arg6[%c14, %c0_18], %33 {strides = array<i32>} : memref<44x64xf32, #tpu.memory_space<vmem>>, vector<2x64xf32>,
    %35 = vector.extract_strided_slice %18 {offsets = [0, 512], sizes = [2, 64], strides = [1, 1]} : vector<2x1408xf32> to vector<2x64xf32>
    %c16 = arith.constant 16 : index
    %c0_19 = arith.constant 0 : index
    %36 = vector.load %arg6[%c16, %c0_19] : memref<44x64xf32, #tpu.memory_space<vmem>>, vector<2x64xf32>
    tpu.vector_store %arg6[%c16, %c0_19], %35 {strides = array<i32>} : memref<44x64xf32, #tpu.memory_space<vmem>>, vector<2x64xf32>,
    %37 = vector.extract_strided_slice %18 {offsets = [0, 576], sizes = [2, 64], strides = [1, 1]} : vector<2x1408xf32> to vector<2x64xf32>
    %c18 = arith.constant 18 : index
    %c0_20 = arith.constant 0 : index
    %38 = vector.load %arg6[%c18, %c0_20] : memref<44x64xf32, #tpu.memory_space<vmem>>, vector<2x64xf32>
    tpu.vector_store %arg6[%c18, %c0_20], %37 {strides = array<i32>} : memref<44x64xf32, #tpu.memory_space<vmem>>, vector<2x64xf32>,
    %39 = vector.extract_strided_slice %18 {offsets = [0, 640], sizes = [2, 64], strides = [1, 1]} : vector<2x1408xf32> to vector<2x64xf32>
    %c20 = arith.constant 20 : index
    %c0_21 = arith.constant 0 : index
    %40 = vector.load %arg6[%c20, %c0_21] : memref<44x64xf32, #tpu.memory_space<vmem>>, vector<2x64xf32>
    tpu.vector_store %arg6[%c20, %c0_21], %39 {strides = array<i32>} : memref<44x64xf32, #tpu.memory_space<vmem>>, vector<2x64xf32>,
    %41 = vector.extract_strided_slice %18 {offsets = [0, 704], sizes = [2, 64], strides = [1, 1]} : vector<2x1408xf32> to vector<2x64xf32>
    %c22 = arith.constant 22 : index
    %c0_22 = arith.constant 0 : index
    %42 = vector.load %arg6[%c22, %c0_22] : memref<44x64xf32, #tpu.memory_space<vmem>>, vector<2x64xf32>
    tpu.vector_store %arg6[%c22, %c0_22], %41 {strides = array<i32>} : memref<44x64xf32, #tpu.memory_space<vmem>>, vector<2x64xf32>,
    %43 = vector.extract_strided_slice %18 {offsets = [0, 768], sizes = [2, 64], strides = [1, 1]} : vector<2x1408xf32> to vector<2x64xf32>
    %c24 = arith.constant 24 : index
    %c0_23 = arith.constant 0 : index
    %44 = vector.load %arg6[%c24, %c0_23] : memref<44x64xf32, #tpu.memory_space<vmem>>, vector<2x64xf32>
    tpu.vector_store %arg6[%c24, %c0_23], %43 {strides = array<i32>} : memref<44x64xf32, #tpu.memory_space<vmem>>, vector<2x64xf32>,
    %45 = vector.extract_strided_slice %18 {offsets = [0, 832], sizes = [2, 64], strides = [1, 1]} : vector<2x1408xf32> to vector<2x64xf32>
    %c26 = arith.constant 26 : index
    %c0_24 = arith.constant 0 : index
    %46 = vector.load %arg6[%c26, %c0_24] : memref<44x64xf32, #tpu.memory_space<vmem>>, vector<2x64xf32>
    tpu.vector_store %arg6[%c26, %c0_24], %45 {strides = array<i32>} : memref<44x64xf32, #tpu.memory_space<vmem>>, vector<2x64xf32>,
    %47 = vector.extract_strided_slice %18 {offsets = [0, 896], sizes = [2, 64], strides = [1, 1]} : vector<2x1408xf32> to vector<2x64xf32>
    %c28 = arith.constant 28 : index
    %c0_25 = arith.constant 0 : index
    %48 = vector.load %arg6[%c28, %c0_25] : memref<44x64xf32, #tpu.memory_space<vmem>>, vector<2x64xf32>
    tpu.vector_store %arg6[%c28, %c0_25], %47 {strides = array<i32>} : memref<44x64xf32, #tpu.memory_space<vmem>>, vector<2x64xf32>,
    %49 = vector.extract_strided_slice %18 {offsets = [0, 960], sizes = [2, 64], strides = [1, 1]} : vector<2x1408xf32> to vector<2x64xf32>
    %c30 = arith.constant 30 : index
    %c0_26 = arith.constant 0 : index
    %50 = vector.load %arg6[%c30, %c0_26] : memref<44x64xf32, #tpu.memory_space<vmem>>, vector<2x64xf32>
    tpu.vector_store %arg6[%c30, %c0_26], %49 {strides = array<i32>} : memref<44x64xf32, #tpu.memory_space<vmem>>, vector<2x64xf32>,
    %51 = vector.extract_strided_slice %18 {offsets = [0, 1024], sizes = [2, 64], strides = [1, 1]} : vector<2x1408xf32> to vector<2x64xf32>
    %c32_27 = arith.constant 32 : index
    %c0_28 = arith.constant 0 : index
    %52 = vector.load %arg6[%c32_27, %c0_28] : memref<44x64xf32, #tpu.memory_space<vmem>>, vector<2x64xf32>
    tpu.vector_store %arg6[%c32_27, %c0_28], %51 {strides = array<i32>} : memref<44x64xf32, #tpu.memory_space<vmem>>, vector<2x64xf32>,
    %53 = vector.extract_strided_slice %18 {offsets = [0, 1088], sizes = [2, 64], strides = [1, 1]} : vector<2x1408xf32> to vector<2x64xf32>
    %c34 = arith.constant 34 : index
    %c0_29 = arith.constant 0 : index
    %54 = vector.load %arg6[%c34, %c0_29] : memref<44x64xf32, #tpu.memory_space<vmem>>, vector<2x64xf32>
    tpu.vector_store %arg6[%c34, %c0_29], %53 {strides = array<i32>} : memref<44x64xf32, #tpu.memory_space<vmem>>, vector<2x64xf32>,
    %55 = vector.extract_strided_slice %18 {offsets = [0, 1152], sizes = [2, 64], strides = [1, 1]} : vector<2x1408xf32> to vector<2x64xf32>
    %c36 = arith.constant 36 : index
    %c0_30 = arith.constant 0 : index
    %56 = vector.load %arg6[%c36, %c0_30] : memref<44x64xf32, #tpu.memory_space<vmem>>, vector<2x64xf32>
    tpu.vector_store %arg6[%c36, %c0_30], %55 {strides = array<i32>} : memref<44x64xf32, #tpu.memory_space<vmem>>, vector<2x64xf32>,
    %57 = vector.extract_strided_slice %18 {offsets = [0, 1216], sizes = [2, 64], strides = [1, 1]} : vector<2x1408xf32> to vector<2x64xf32>
    %c38 = arith.constant 38 : index
    %c0_31 = arith.constant 0 : index
    %58 = vector.load %arg6[%c38, %c0_31] : memref<44x64xf32, #tpu.memory_space<vmem>>, vector<2x64xf32>
    tpu.vector_store %arg6[%c38, %c0_31], %57 {strides = array<i32>} : memref<44x64xf32, #tpu.memory_space<vmem>>, vector<2x64xf32>,
    %59 = vector.extract_strided_slice %18 {offsets = [0, 1280], sizes = [2, 64], strides = [1, 1]} : vector<2x1408xf32> to vector<2x64xf32>
    %c40 = arith.constant 40 : index
    %c0_32 = arith.constant 0 : index
    %60 = vector.load %arg6[%c40, %c0_32] : memref<44x64xf32, #tpu.memory_space<vmem>>, vector<2x64xf32>
    tpu.vector_store %arg6[%c40, %c0_32], %59 {strides = array<i32>} : memref<44x64xf32, #tpu.memory_space<vmem>>, vector<2x64xf32>,
    %61 = vector.extract_strided_slice %18 {offsets = [0, 1344], sizes = [2, 64], strides = [1, 1]} : vector<2x1408xf32> to vector<2x64xf32>
    %c42 = arith.constant 42 : index
    %c0_33 = arith.constant 0 : index
    %62 = vector.load %arg6[%c42, %c0_33] : memref<44x64xf32, #tpu.memory_space<vmem>>, vector<2x64xf32>
    tpu.vector_store %arg6[%c42, %c0_33], %61 {strides = array<i32>} : memref<44x64xf32, #tpu.memory_space<vmem>>, vector<2x64xf32>,
    %c0_34 = arith.constant 0 : index
    %c0_35 = arith.constant 0 : index
    %63 = vector.load %arg6[%c0_34, %c0_35] : memref<44x64xf32, #tpu.memory_space<vmem>>, vector<44x64xf32>
    %64 = tpu.iota {dimensions = array<i32: 0>} : vector<44x1xi32>
    %c2_i32 = arith.constant 2 : i32
    %65 = vector.broadcast %c2_i32 : i32 to vector<44x1xi32>
    %66 = arith.cmpi sge, %64, %65 : vector<44x1xi32>
    %c42_i32 = arith.constant 42 : i32
    %67 = vector.broadcast %c42_i32 : i32 to vector<44x1xi32>
    %68 = arith.cmpi slt, %64, %67 : vector<44x1xi32>
    %c2_i32_36 = arith.constant 2 : i32
    %69 = tpu.dynamic_rotate %63 by %c2_i32_36 dim 0 : vector<44x64xf32>, i32 -> vector<44x64xf32>
    %cst_37 = arith.constant 0.000000e+00 : f32
    %70 = vector.shape_cast %66 : vector<44x1xi1> to vector<44x1xi1>
    %71 = vector.broadcast %70 : vector<44x1xi1> to vector<44x64xi1>
    %72 = vector.broadcast %cst_37 : f32 to vector<44x64xf32>
    %73 = arith.select %71, %69, %72 : vector<44x64xi1>, vector<44x64xf32>
    %c42_i32_38 = arith.constant 42 : i32
    %74 = tpu.dynamic_rotate %63 by %c42_i32_38 dim 0 : vector<44x64xf32>, i32 -> vector<44x64xf32>
    %cst_39 = arith.constant 0.000000e+00 : f32
    %75 = vector.shape_cast %68 : vector<44x1xi1> to vector<44x1xi1>
    %76 = vector.broadcast %75 : vector<44x1xi1> to vector<44x64xi1>
    %77 = vector.broadcast %cst_39 : f32 to vector<44x64xf32>
    %78 = arith.select %76, %74, %77 : vector<44x64xi1>, vector<44x64xf32>
    %c0_40 = arith.constant 0 : index
    %c0_41 = arith.constant 0 : index
    %79 = vector.load %arg3[%c0_40, %c0_41] : memref<193x32xf32, #tpu.memory_space<vmem>>, vector<64x32xf32>
    %cst_42 = arith.constant dense<0.000000e+00> : vector<44x32xf32>
    %80 = tpu.matmul %73, %79, %cst_42 {dimension_numbers = #tpu.dot_dimension_numbers<[1], [0], [0], [1], [0, 0, 1, 1], [], []>} : vector<44x64xf32>, vector<64x32xf32>, vector<44x32xf32> -> vector<44x32xf32>
    %c64 = arith.constant 64 : index
    %c0_43 = arith.constant 0 : index
    %81 = vector.load %arg3[%c64, %c0_43] : memref<193x32xf32, #tpu.memory_space<vmem>>, vector<64x32xf32>
    %cst_44 = arith.constant dense<0.000000e+00> : vector<44x32xf32>
    %82 = tpu.matmul %63, %81, %cst_44 {dimension_numbers = #tpu.dot_dimension_numbers<[1], [0], [0], [1], [0, 0, 1, 1], [], []>} : vector<44x64xf32>, vector<64x32xf32>, vector<44x32xf32> -> vector<44x32xf32>
    %83 = arith.addf %80, %82 : vector<44x32xf32>
    %c128 = arith.constant 128 : index
    %c0_45 = arith.constant 0 : index
    %84 = vector.load %arg3[%c128, %c0_45] : memref<193x32xf32, #tpu.memory_space<vmem>>, vector<64x32xf32>
    %cst_46 = arith.constant dense<0.000000e+00> : vector<44x32xf32>
    %85 = tpu.matmul %78, %84, %cst_46 {dimension_numbers = #tpu.dot_dimension_numbers<[1], [0], [0], [1], [0, 0, 1, 1], [], []>} : vector<44x64xf32>, vector<64x32xf32>, vector<44x32xf32> -> vector<44x32xf32>
    %86 = arith.addf %83, %85 : vector<44x32xf32>
    %c192 = arith.constant 192 : index
    %c0_47 = arith.constant 0 : index
    %87 = vector.load %arg3[%c192, %c0_47] : memref<193x32xf32, #tpu.memory_space<vmem>>, vector<1x32xf32>
    %88 = vector.broadcast %87 : vector<1x32xf32> to vector<44x32xf32>
    %89 = arith.addf %86, %88 : vector<44x32xf32>
    %cst_48 = arith.constant 0.000000e+00 : f32
    %90 = vector.broadcast %cst_48 : f32 to vector<44x32xf32>
    %91 = arith.maximumf %89, %90 : vector<44x32xf32>
    %c2_i32_49 = arith.constant 2 : i32
    %92 = tpu.dynamic_rotate %91 by %c2_i32_49 dim 0 : vector<44x32xf32>, i32 -> vector<44x32xf32>
    %cst_50 = arith.constant 0.000000e+00 : f32
    %93 = vector.shape_cast %66 : vector<44x1xi1> to vector<44x1xi1>
    %94 = vector.broadcast %93 : vector<44x1xi1> to vector<44x32xi1>
    %95 = vector.broadcast %cst_50 : f32 to vector<44x32xf32>
    %96 = arith.select %94, %92, %95 : vector<44x32xi1>, vector<44x32xf32>
    %c42_i32_51 = arith.constant 42 : i32
    %97 = tpu.dynamic_rotate %91 by %c42_i32_51 dim 0 : vector<44x32xf32>, i32 -> vector<44x32xf32>
    %cst_52 = arith.constant 0.000000e+00 : f32
    %98 = vector.shape_cast %68 : vector<44x1xi1> to vector<44x1xi1>
    %99 = vector.broadcast %98 : vector<44x1xi1> to vector<44x32xi1>
    %100 = vector.broadcast %cst_52 : f32 to vector<44x32xf32>
    %101 = arith.select %99, %97, %100 : vector<44x32xi1>, vector<44x32xf32>
    %c0_53 = arith.constant 0 : index
    %c0_54 = arith.constant 0 : index
    %102 = vector.load %arg4[%c0_53, %c0_54] : memref<97x5xf32, #tpu.memory_space<vmem>>, vector<32x5xf32>
    %cst_55 = arith.constant dense<0.000000e+00> : vector<44x5xf32>
    %103 = tpu.matmul %96, %102, %cst_55 {dimension_numbers = #tpu.dot_dimension_numbers<[1], [0], [0], [1], [0, 0, 1, 1], [], []>} : vector<44x32xf32>, vector<32x5xf32>, vector<44x5xf32> -> vector<44x5xf32>
    %c32_56 = arith.constant 32 : index
    %c0_57 = arith.constant 0 : index
    %104 = vector.load %arg4[%c32_56, %c0_57] : memref<97x5xf32, #tpu.memory_space<vmem>>, vector<32x5xf32>
    %cst_58 = arith.constant dense<0.000000e+00> : vector<44x5xf32>
    %105 = tpu.matmul %91, %104, %cst_58 {dimension_numbers = #tpu.dot_dimension_numbers<[1], [0], [0], [1], [0, 0, 1, 1], [], []>} : vector<44x32xf32>, vector<32x5xf32>, vector<44x5xf32> -> vector<44x5xf32>
    %106 = arith.addf %103, %105 : vector<44x5xf32>
    %c64_59 = arith.constant 64 : index
    %c0_60 = arith.constant 0 : index
    %107 = vector.load %arg4[%c64_59, %c0_60] : memref<97x5xf32, #tpu.memory_space<vmem>>, vector<32x5xf32>
    %cst_61 = arith.constant dense<0.000000e+00> : vector<44x5xf32>
    %108 = tpu.matmul %101, %107, %cst_61 {dimension_numbers = #tpu.dot_dimension_numbers<[1], [0], [0], [1], [0, 0, 1, 1], [], []>} : vector<44x32xf32>, vector<32x5xf32>, vector<44x5xf32> -> vector<44x5xf32>
    %109 = arith.addf %106, %108 : vector<44x5xf32>
    %c96 = arith.constant 96 : index
    %c0_62 = arith.constant 0 : index
    %110 = vector.load %arg4[%c96, %c0_62] : memref<97x5xf32, #tpu.memory_space<vmem>>, vector<1x5xf32>
    %111 = vector.broadcast %110 : vector<1x5xf32> to vector<44x5xf32>
    %112 = arith.addf %109, %111 : vector<44x5xf32>
    %cst_63 = arith.constant dense<0xFF800000> : vector<44xf32>
    %113 = vector.multi_reduction <maximumf>, %112, %cst_63 [1] : vector<44x5xf32> to vector<44xf32>
    %114 = vector.shape_cast %113 : vector<44xf32> to vector<44x1xf32>
    %115 = vector.broadcast %114 : vector<44x1xf32> to vector<44x5xf32>
    %116 = arith.subf %112, %115 : vector<44x5xf32>
    %117 = math.exp %116 : vector<44x5xf32>
    %cst_64 = arith.constant dense<0.000000e+00> : vector<44xf32>
    %118 = vector.multi_reduction <add>, %117, %cst_64 [1] : vector<44x5xf32> to vector<44xf32>
    %119 = vector.shape_cast %118 : vector<44xf32> to vector<44x1xf32>
    %120 = tpu.reciprocal %119 : vector<44x1xf32> -> vector<44x1xf32>
    %121 = vector.broadcast %120 : vector<44x1xf32> to vector<44x5xf32>
    %122 = arith.mulf %117, %121 : vector<44x5xf32>
    %c0_65 = arith.constant 0 : index
    %c0_66 = arith.constant 0 : index
    %123 = vector.load %arg5[%c0_65, %c0_66] : memref<44x5xf32, #tpu.memory_space<vmem>>, vector<44x5xf32>
    tpu.vector_store %arg5[%c0_65, %c0_66], %122 {strides = array<i32>} : memref<44x5xf32, #tpu.memory_space<vmem>>, vector<44x5xf32>,
    return
  }
}

</mosaic_0001>

<bundles_post_ra>
// kernel: decoder_forward.1
= control target key start
LH: loop header
LB: loop body
LE: loop exit
PB: predicated region body
PF: predicated region fallthrough
CT: control target
= control target key end

     0   :  { %10 = vsyncpa [#allocation4], 0  ;;  %s3356_s18 = smov [#allocation3]   ;;  %s3725_s0 = inlined_call_operand.vmem [shape: f32[2,32], index: 0, kind: input, shape index: {}]   ;;  %s3726_s1 = inlined_call_operand.vmem [shape: bf16[33,256], index: 1, kind: input, shape index: {}]   ;;  %s3727_s2 = inlined_call_operand.hbm [shape: bf16[257,1408], index: 2, kind: input, shape index: {}]   ;;  %s3728_s3 = inlined_call_operand.vmem [shape: f32[193,32], index: 3, kind: input, shape index: {}]   ;;  %s3729_s4 = inlined_call_operand.vmem [shape: f32[97,5], index: 4, kind: input, shape index: {}]   ;;  %s3730_s5 = inlined_call_operand.vmem [shape: f32[44,5], index: 5, kind: output, shape index: {}]  }
   0x1   :  { %s20_s19 = sshll.u32 %s3356_s18, 4  ;;  %s21_s19 = int_to_ptr.vmem [resolvable:$true] %s20_s19 }
   0x2   :  { %s3342_s20 = scalar_lea.vmem %s21_s19, 23232  ;;  %p3347_p1 = scmp.lt.s32.totalorder %s21_s19, %s21_s19 }
   0x3   :  { %p3343_p0 = scmp.ne.s32.totalorder %s21_s19, %s3342_s20  ;;  %p3348_p2 = scmp.lt.s32.totalorder %s3342_s20, %s3342_s20 }
   0x5   :  { %p3349_p3 = por %p3348_p2, %p3347_p1 }
   0x7   :  { %p3350_p4 = pnand %p3349_p3, %p3343_p0 }
   0x9   :  { %3353 = shalt.err (!%p3350_p4)
}
   0xa   :  { %s3357_s21 = smov 704   ;;  %s3358_s22 = smov 44  }
   0xb   :  { %26 = dma.hbm_to_vmem [thread:$0]  %s3727_s2, 23232, %s21_s19, [#allocation4], %s3357_s21, %s3357_s21, %s3358_s22  }
   0xc   :  { %3354 = dma.done.wait [#allocation4], 23232  }
   0xd   :  { %3355 = vsyncadd [#allocation4], 4294944064  ;;  %v3359_v0 = vmov 0   ;;  %v3048_v1 = vld [vmem:[%s3726_s1 + $0x14] ss:$8 sps:$4 sm:$0xff]   ;;  %vm72_vm0 = vcmask 261120  }
   0xe   :  { %108 = vmatprep.mubr.bf16.mxu0 %v3359_v0  ;;  %v3050_v2 = vld [vmem:[%s3726_s1 + $0x10] ss:$8 sps:$4 sm:$0xff]   ;;  %88 = vmatprep.subr.bf16.mxu0 %v3048_v1  ;;  %v3051_v3 = vld [vmem:[%s3726_s1 + $0x4] ss:$8 sps:$4 sm:$0xff]   ;;  %v3053_v4 = vld [vmem:[%s3726_s1] ss:$8 sps:$4 sm:$0xff]  }
   0xf   :  { %v35_v5 = vld [vmem:[%s3725_s0] sm:$0x3]  ;;  %89 = vmatpush1.bf16.msra.mxu0 %v3050_v2  ;;  %v3054_v6 = vld [vmem:[#allocation3 + $0x26c] ss:$44 sps:$4 sm:$0xff]   ;;  %v3058_v7 = vld [vmem:[#allocation3 + $0x274] ss:$44 sps:$4 sm:$0xff]  }
  0x10   :  { %90 = vmatprep.subr.bf16.mxu0 %v3051_v3  ;;  %1270 = vmatprep.subr.bf16.mxu1 %v3054_v6  ;;  %v3059_v8 = vld [vmem:[#allocation3 + $0x268] ss:$44 sps:$4 sm:$0xff]   ;;  %v36_v9 = vpack.c.bf16 %v35_v5, %v35_v5  ;;  %v3056_v11 = vld [vmem:[#allocation3 + $0x270] ss:$44 sps:$4 sm:$0xff]   ;;  %v3062_v15 = vld [vmem:[#allocation3 + $0x218] ss:$44 sps:$4 sm:$0xff]  }
  0x11   :  { %v3060_v10 = vld [vmem:[#allocation3 + $0x214] ss:$44 sps:$4 sm:$0xff]   ;;  %1271 = vmatpush1.bf16.msra.mxu1 %v3059_v8  ;;  %v3064_v12 = vld [vmem:[#allocation3 + $0x21c] ss:$44 sps:$4 sm:$0xff]   ;;  %v3070_v16 = vld [vmem:[#allocation3 + $0x1c4] ss:$44 sps:$4 sm:$0xff]  }
  0x12   :  { %1272 = vmatprep.subr.bf16.mxu1 %v3060_v10  ;;  %v3065_v13 = vld [vmem:[#allocation3 + $0x210] ss:$44 sps:$4 sm:$0xff]   ;;  %v3071_v17 = vld [vmem:[#allocation3 + $0x1b8] ss:$44 sps:$4 sm:$0xff]   ;;  %v3068_v19 = vld [vmem:[#allocation3 + $0x1c0] ss:$44 sps:$4 sm:$0xff]  }
  0x13   :  { %91 = vmatpush1.bf16.msra.mxu0 %v3053_v4  ;;  %v3066_v14 = vld [vmem:[#allocation3 + $0x1bc] ss:$44 sps:$4 sm:$0xff]   ;;  %v3072_v18 = vld [vmem:[#allocation3 + $0x164] ss:$44 sps:$4 sm:$0xff]   ;;  %v3076_v20 = vld [vmem:[#allocation3 + $0x16c] ss:$44 sps:$4 sm:$0xff]  }
  0x14   :  { %1311 = vmatprep.subr.bf16.mxu0 %v3058_v7  ;;  %v3077_v21 = vld [vmem:[#allocation3 + $0x160] ss:$44 sps:$4 sm:$0xff]   ;;  %v3074_v23 = vld [vmem:[#allocation3 + $0x168] ss:$44 sps:$4 sm:$0xff]   ;;  %v3080_v27 = vld [vmem:[#allocation3 + $0x110] ss:$44 sps:$4 sm:$0xff]  }
  0x15   :  { %1273 = vmatpush1.bf16.msra.mxu1 %v3065_v13  ;;  %v3078_v22 = vld [vmem:[#allocation3 + $0x10c] ss:$44 sps:$4 sm:$0xff]   ;;  %v3082_v24 = vld [vmem:[#allocation3 + $0x114] ss:$44 sps:$4 sm:$0xff]   ;;  %v3088_v28 = vld [vmem:[#allocation3 + $0xbc] ss:$44 sps:$4 sm:$0xff]  }
  0x16   :  { %2608 = vmatmul.mubr.msk.bf16.vlgmr.msra.gmra.mxu0 %vm72_vm0, %v36_v9  ;;  %1274 = vmatprep.subr.bf16.mxu1 %v3066_v14  ;;  %v3083_v25 = vld [vmem:[#allocation3 + $0x108] ss:$44 sps:$4 sm:$0xff]   ;;  %v3089_v29 = vld [vmem:[#allocation3 + $0xb0] ss:$44 sps:$4 sm:$0xff]   ;;  %v3086_v31 = vld [vmem:[#allocation3 + $0xb8] ss:$44 sps:$4 sm:$0xff]   ;;  %v44_v9 = vlaneseq }
  0x17   :  { %1312 = vmatpush1.bf16.msra.mxu0 %v3056_v11  ;;  %v3084_v26 = vld [vmem:[#allocation3 + $0xb4] ss:$44 sps:$4 sm:$0xff]   ;;  %v3090_v30 = vld [vmem:[#allocation3 + $0x5c] ss:$44 sps:$4 sm:$0xff]   ;;  %v3094_v32 = vld [vmem:[#allocation3 + $0x64] ss:$44 sps:$4 sm:$0xff]  }
  0x18   :  { %1313 = vmatprep.subr.bf16.mxu0 %v3064_v12  ;;  %v3095_v33 = vld [vmem:[#allocation3 + $0x58] ss:$44 sps:$4 sm:$0xff]   ;;  %v3092_v35 = vld [vmem:[#allocation3 + $0x60] ss:$44 sps:$4 sm:$0xff]   ;;  %v3098_v39 = vld [vmem:[#allocation3 + $0x8] ss:$44 sps:$4 sm:$0xff]  }
  0x19   :  { %1275 = vmatpush1.bf16.msra.mxu1 %v3071_v17  ;;  %v3096_v34 = vld [vmem:[#allocation3 + $0x4] ss:$44 sps:$4 sm:$0xff]   ;;  %v3100_v36 = vld [vmem:[#allocation3 + $0xc] ss:$44 sps:$4 sm:$0xff]   ;;  %v3106_v40 = vld [vmem:[#allocation3 + $0x534] ss:$44 sps:$4 sm:$0xff]  }
  0x1a   :  { %1276 = vmatprep.subr.bf16.mxu1 %v3072_v18  ;;  %v3101_v37 = vld [vmem:[#allocation3] ss:$44 sps:$4 sm:$0xff]   ;;  %v3107_v41 = vld [vmem:[#allocation3 + $0x528] ss:$44 sps:$4 sm:$0xff]   ;;  %v3104_v43 = vld [vmem:[#allocation3 + $0x530] ss:$44 sps:$4 sm:$0xff]  }
  0x1b   :  { %1314 = vmatpush1.bf16.msra.mxu0 %v3062_v15  ;;  %v3102_v38 = vld [vmem:[#allocation3 + $0x52c] ss:$44 sps:$4 sm:$0xff]   ;;  %v3108_v42 = vld [vmem:[#allocation3 + $0x4d4] ss:$44 sps:$4 sm:$0xff]   ;;  %v3113_v44 = vld [vmem:[#allocation3 + $0x4d0] ss:$44 sps:$4 sm:$0xff]  }
  0x1c   :  { %1315 = vmatprep.subr.bf16.mxu0 %v3070_v16  ;;  %v3112_v45 = vld [vmem:[#allocation3 + $0x4dc] ss:$44 sps:$4 sm:$0xff]   ;;  %v3110_v47 = vld [vmem:[#allocation3 + $0x4d8] ss:$44 sps:$4 sm:$0xff]   ;;  %v3116_v51 = vld [vmem:[#allocation3 + $0x480] ss:$44 sps:$4 sm:$0xff]  }
  0x1d   :  { %1277 = vmatpush1.bf16.msra.mxu1 %v3077_v21  ;;  %v3114_v46 = vld [vmem:[#allocation3 + $0x47c] ss:$44 sps:$4 sm:$0xff]   ;;  %v3119_v48 = vld [vmem:[#allocation3 + $0x478] ss:$44 sps:$4 sm:$0xff]   ;;  %v3125_v52 = vld [vmem:[#allocation3 + $0x420] ss:$44 sps:$4 sm:$0xff]  }
  0x1e   :  { %1278 = vmatprep.subr.bf16.mxu1 %v3078_v22  ;;  %v3118_v49 = vld [vmem:[#allocation3 + $0x484] ss:$44 sps:$4 sm:$0xff]   ;;  %v3124_v53 = vld [vmem:[#allocation3 + $0x42c] ss:$44 sps:$4 sm:$0xff]   ;;  %v3122_v55 = vld [vmem:[#allocation3 + $0x428] ss:$44 sps:$4 sm:$0xff]  }
  0x1f   :  { %1316 = vmatpush1.bf16.msra.mxu0 %v3068_v19  ;;  %v3120_v50 = vld [vmem:[#allocation3 + $0x424] ss:$44 sps:$4 sm:$0xff]   ;;  %v3126_v54 = vld [vmem:[#allocation3 + $0x3cc] ss:$44 sps:$4 sm:$0xff]   ;;  %v3131_v56 = vld [vmem:[#allocation3 + $0x3c8] ss:$44 sps:$4 sm:$0xff]  }
  0x20   :  { %1317 = vmatprep.subr.bf16.mxu0 %v3076_v20  ;;  %v3130_v57 = vld [vmem:[#allocation3 + $0x3d4] ss:$44 sps:$4 sm:$0xff]   ;;  %v3128_v59 = vld [vmem:[#allocation3 + $0x3d0] ss:$44 sps:$4 sm:$0xff]   ;;  %v3134_v62 = vld [vmem:[#allocation3 + $0x378] ss:$44 sps:$4 sm:$0xff]  }
  0x21   :  { %1279 = vmatpush1.bf16.msra.mxu1 %v3083_v25  ;;  %v3132_v58 = vld [vmem:[#allocation3 + $0x374] ss:$44 sps:$4 sm:$0xff]   ;;  %v3137_v60 = vld [vmem:[#allocation3 + $0x370] ss:$44 sps:$4 sm:$0xff]   ;;  %v3143_v2 = vld [vmem:[#allocation3 + $0x318] ss:$44 sps:$4 sm:$0xff]  }
  0x22   :  { %1280 = vmatprep.subr.bf16.mxu1 %v3084_v26  ;;  %v3136_v61 = vld [vmem:[#allocation3 + $0x37c] ss:$44 sps:$4 sm:$0xff]   ;;  %v3142_v0 = vld [vmem:[#allocation3 + $0x324] ss:$44 sps:$4 sm:$0xff]   ;;  %v3140_v1 = vld [vmem:[#allocation3 + $0x320] ss:$44 sps:$4 sm:$0xff]  }
  0x23   :  { %1318 = vmatpush1.bf16.msra.mxu0 %v3074_v23  ;;  %v3138_v63 = vld [vmem:[#allocation3 + $0x31c] ss:$44 sps:$4 sm:$0xff]   ;;  %v3144_v3 = vld [vmem:[#allocation3 + $0x2c4] ss:$44 sps:$4 sm:$0xff]   ;;  %v3148_v4 = vld [vmem:[#allocation3 + $0x2cc] ss:$44 sps:$4 sm:$0xff]  }
  0x24   :  { %1319 = vmatprep.subr.bf16.mxu0 %v3082_v24  ;;  %v3146_v5 = vld [vmem:[#allocation3 + $0x2c8] ss:$44 sps:$4 sm:$0xff]   ;;  %v3149_v6 = vld [vmem:[#allocation3 + $0x2c0] ss:$44 sps:$4 sm:$0xff]   ;;  %v3155_v8 = vld [vmem:[#allocation3 + $0x284] ss:$44 sps:$4 sm:$0xff]  }
  0x25   :  { %1281 = vmatpush1.bf16.msra.mxu1 %v3089_v29  ;;  %v3152_v7 = vld [vmem:[#allocation3 + $0x27c] ss:$44 sps:$4 sm:$0xff]   ;;  %v3410_v10 = vshrl.u32 %v44_v9, 7  ;;  %v41_v11 = vld [vmem:[%s3726_s1 + $0x20] sm:$0x11]  ;;  %vm1526_vm1 = vcmask 517120  }
  0x26   :  { %1282 = vmatprep.subr.bf16.mxu1 %v3090_v30  ;;  %v42_v12 = vunpack.c.l.bf16 %v41_v11  ;;  %v43_v14 = vunpack.c.h.bf16 %v41_v11  ;;  %v3150_v26 = vld [vmem:[#allocation3 + $0x278] ss:$44 sps:$4 sm:$0xff]   ;;  %v3224_v9 = vld [vmem:[#allocation3 + $0x3dc] ss:$44 sps:$4 sm:$0xff]   ;;  %s3360_s25 = smov 64   ;;  %vm1728_vm2 = vcmask 523264  }
  0x27   :  { %1320 = vmatpush1.bf16.msra.mxu0 %v3080_v27  ;;  %v3416_v13 = vsub.s32 0, %v3410_v10  ;;  %v3153_v27 = vld [vmem:[#allocation3 + $0x280] ss:$44 sps:$4 sm:$0xff]   ;;  %v3158_v29 = vld [vmem:[#allocation3 + $0x224] ss:$44 sps:$4 sm:$0xff]   ;;  %vm1649_vm3 = vcmask 1045504  }
  0x28   :  { %1321 = vmatprep.subr.bf16.mxu0 %v3088_v28  ;;  %v3161_v30 = vld [vmem:[#allocation3 + $0x22c] ss:$44 sps:$4 sm:$0xff]   ;;  %v3227_v11 = vld [vmem:[#allocation3 + $0x3e4] ss:$44 sps:$4 sm:$0xff]   ;;  %vm1618_vm4 = vcmask 1047556   ;;  %vm1606_vm5 = vcmp.ge.s32.totalorder %v3410_v10, 2 }
  0x29   :  { %1283 = vmatpush1.bf16.msra.mxu1 %v3095_v33  ;;  %v47_v15 = vrot.slane %v42_v12, %v3416_v13  ;;  %v51_v16 = vrot.slane %v43_v14, %v3416_v13  ;;  %v3164_v33 = vld [vmem:[#allocation3 + $0x1cc] ss:$44 sps:$4 sm:$0xff]   ;;  %vm2525_vm7 = vcmask 39936   ;;  %vm2541_vm8 = vcmask 35840  }
  0x2a   :  { %1284 = vmatprep.subr.bf16.mxu1 %v3096_v34  ;;  %v3167_v34 = vld [vmem:[#allocation3 + $0x1d4] ss:$44 sps:$4 sm:$0xff]   ;;  %v3222_v12 = vld [vmem:[#allocation3 + $0x3d8] ss:$44 sps:$4 sm:$0xff]  }
  0x2b   :  { %1322 = vmatpush1.bf16.msra.mxu0 %v3086_v31  ;;  %v3156_v31 = vld [vmem:[#allocation3 + $0x220] ss:$44 sps:$4 sm:$0xff]  }
  0x2c   :  { %1323 = vmatprep.subr.bf16.mxu0 %v3094_v32  ;;  %v3159_v32 = vld [vmem:[#allocation3 + $0x228] ss:$44 sps:$4 sm:$0xff]   ;;  %v3225_v14 = vld [vmem:[#allocation3 + $0x3e0] ss:$44 sps:$4 sm:$0xff]  }
  0x2d   :  { %1285 = vmatpush1.bf16.msra.mxu1 %v3101_v37  ;;  %v3170_v37 = vld [vmem:[#allocation3 + $0x174] ss:$44 sps:$4 sm:$0xff]  }
  0x2e   :  { %1286 = vmatprep.subr.bf16.mxu1 %v3102_v38  ;;  %v3173_v38 = vld [vmem:[#allocation3 + $0x17c] ss:$44 sps:$4 sm:$0xff]  }
  0x2f   :  { %1324 = vmatpush1.bf16.msra.mxu0 %v3092_v35  ;;  %v3162_v35 = vld [vmem:[#allocation3 + $0x1c8] ss:$44 sps:$4 sm:$0xff]  }
  0x30   :  { %1325 = vmatprep.subr.bf16.mxu0 %v3100_v36  ;;  %v3165_v36 = vld [vmem:[#allocation3 + $0x1d0] ss:$44 sps:$4 sm:$0xff]  }
  0x31   :  { %1287 = vmatpush2.bf16.msra.mxu1 %v3107_v41  ;;  %v3176_v41 = vld [vmem:[#allocation3 + $0x11c] ss:$44 sps:$4 sm:$0xff]  }
  0x32   :  { %1288 = vmatprep.subr.bf16.mxu1 %v3108_v42  ;;  %v3179_v42 = vld [vmem:[#allocation3 + $0x124] ss:$44 sps:$4 sm:$0xff]  }
  0x33   :  { %1326 = vmatpush1.bf16.msra.mxu0 %v3098_v39  ;;  %v3168_v39 = vld [vmem:[#allocation3 + $0x170] ss:$44 sps:$4 sm:$0xff]  }
  0x34   :  { %1327 = vmatprep.subr.bf16.mxu0 %v3106_v40  ;;  %v3171_v40 = vld [vmem:[#allocation3 + $0x178] ss:$44 sps:$4 sm:$0xff]  }
  0x35   :  { %1289 = vmatpush2.bf16.msra.mxu1 %v3113_v44  ;;  %v3177_v44 = vld [vmem:[#allocation3 + $0x120] ss:$44 sps:$4 sm:$0xff]  }
  0x36   :  { %1290 = vmatprep.subr.bf16.mxu1 %v3114_v46  ;;  %v3185_v46 = vld [vmem:[#allocation3 + $0xcc] ss:$44 sps:$4 sm:$0xff]  }
  0x37   :  { %1328 = vmatpush2.bf16.msra.mxu0 %v3104_v43  ;;  %v3174_v43 = vld [vmem:[#allocation3 + $0x118] ss:$44 sps:$4 sm:$0xff]  }
  0x38   :  { %1329 = vmatprep.subr.bf16.mxu0 %v3112_v45  ;;  %v3182_v45 = vld [vmem:[#allocation3 + $0xc4] ss:$44 sps:$4 sm:$0xff]  }
  0x39   :  { %1291 = vmatpush2.bf16.msra.mxu1 %v3119_v48  ;;  %v3183_v48 = vld [vmem:[#allocation3 + $0xc8] ss:$44 sps:$4 sm:$0xff]  }
  0x3a   :  { %1292 = vmatprep.subr.bf16.mxu1 %v3120_v50  ;;  %v3191_v50 = vld [vmem:[#allocation3 + $0x74] ss:$44 sps:$4 sm:$0xff]  }
  0x3b   :  { %1330 = vmatpush2.bf16.msra.mxu0 %v3110_v47  ;;  %v3180_v47 = vld [vmem:[#allocation3 + $0xc0] ss:$44 sps:$4 sm:$0xff]  }
  0x3c   :  { %1331 = vmatprep.subr.bf16.mxu0 %v3118_v49  ;;  %v3188_v49 = vld [vmem:[#allocation3 + $0x6c] ss:$44 sps:$4 sm:$0xff]  }
  0x3d   :  { %1293 = vmatpush2.bf16.msra.mxu1 %v3125_v52  ;;  %v3189_v52 = vld [vmem:[#allocation3 + $0x70] ss:$44 sps:$4 sm:$0xff]  }
  0x3e   :  { %1294 = vmatprep.subr.bf16.mxu1 %v3126_v54  ;;  %v3197_v54 = vld [vmem:[#allocation3 + $0x1c] ss:$44 sps:$4 sm:$0xff]  }
  0x3f   :  { %1332 = vmatpush2.bf16.msra.mxu0 %v3116_v51  ;;  %v3186_v51 = vld [vmem:[#allocation3 + $0x68] ss:$44 sps:$4 sm:$0xff]  }
  0x40   :  { %1333 = vmatprep.subr.bf16.mxu0 %v3124_v53  ;;  %v3194_v53 = vld [vmem:[#allocation3 + $0x14] ss:$44 sps:$4 sm:$0xff]  }
  0x41   :  { %1295 = vmatpush2.bf16.msra.mxu1 %v3131_v56  ;;  %v3195_v56 = vld [vmem:[#allocation3 + $0x18] ss:$44 sps:$4 sm:$0xff]  }
  0x42   :  { %1296 = vmatprep.subr.bf16.mxu1 %v3132_v58  ;;  %v3203_v58 = vld [vmem:[#allocation3 + $0x544] ss:$44 sps:$4 sm:$0xff]  }
  0x43   :  { %1334 = vmatpush2.bf16.msra.mxu0 %v3122_v55  ;;  %v3192_v55 = vld [vmem:[#allocation3 + $0x10] ss:$44 sps:$4 sm:$0xff]  }
  0x44   :  { %1335 = vmatprep.subr.bf16.mxu0 %v3130_v57  ;;  %v3200_v57 = vld [vmem:[#allocation3 + $0x53c] ss:$44 sps:$4 sm:$0xff]  }
  0x45   :  { %1297 = vmatpush2.bf16.msra.mxu1 %v3137_v60  ;;  %v3201_v60 = vld [vmem:[#allocation3 + $0x540] ss:$44 sps:$4 sm:$0xff]  }
  0x46   :  { %1298 = vmatprep.subr.bf16.mxu1 %v3138_v63  ;;  %v3204_v63 = vld [vmem:[#allocation3 + $0x4e0] ss:$44 sps:$4 sm:$0xff]  }
  0x47   :  { %1336 = vmatpush2.bf16.msra.mxu0 %v3128_v59  ;;  %v3198_v59 = vld [vmem:[#allocation3 + $0x538] ss:$44 sps:$4 sm:$0xff]  }
  0x48   :  { %1337 = vmatprep.subr.bf16.mxu0 %v3136_v61  ;;  %v3206_v61 = vld [vmem:[#allocation3 + $0x4e4] ss:$44 sps:$4 sm:$0xff]  }
  0x49   :  { %1299 = vmatpush2.bf16.msra.mxu1 %v3143_v2  ;;  %v3215_v2 = vld [vmem:[#allocation3 + $0x494] ss:$44 sps:$4 sm:$0xff]  }
  0x4a   :  { %1300 = vmatprep.subr.bf16.mxu1 %v3144_v3  ;;  %v3210_v3 = vld [vmem:[#allocation3 + $0x488] ss:$44 sps:$4 sm:$0xff]  }
  0x4b   :  { %1338 = vmatpush2.bf16.msra.mxu0 %v3134_v62  ;;  %v3209_v62 = vld [vmem:[#allocation3 + $0x4ec] ss:$44 sps:$4 sm:$0xff]  }
  0x4c   :  { %1339 = vmatprep.subr.bf16.mxu0 %v3142_v0  ;;  %v3207_v0 = vld [vmem:[#allocation3 + $0x4e8] ss:$44 sps:$4 sm:$0xff]  }
  0x4d   :  { %1301 = vmatpush2.bf16.msra.mxu1 %v3149_v6  ;;  %v3221_v6 = vld [vmem:[#allocation3 + $0x43c] ss:$44 sps:$4 sm:$0xff]  }
  0x4e   :  { %1352 = vmatprep.subr.bf16.mxu1 %v3152_v7  ;;  %v3216_v7 = vld [vmem:[#allocation3 + $0x430] ss:$44 sps:$4 sm:$0xff]  }
  0x4f   :  { %1340 = vmatpush2.bf16.msra.mxu0 %v3140_v1  ;;  %v3212_v1 = vld [vmem:[#allocation3 + $0x48c] ss:$44 sps:$4 sm:$0xff]  }
  0x50   :  { %1341 = vmatprep.subr.bf16.mxu0 %v3148_v4  ;;  %v3213_v4 = vld [vmem:[#allocation3 + $0x490] ss:$44 sps:$4 sm:$0xff]  }
  0x53   :  { %1342 = vmatpush2.bf16.msra.mxu0 %v3146_v5  ;;  %v3218_v5 = vld [vmem:[#allocation3 + $0x434] ss:$44 sps:$4 sm:$0xff]  }
  0x54   :  { %1393 = vmatprep.subr.bf16.mxu0 %v3155_v8  ;;  %v3219_v8 = vld [vmem:[#allocation3 + $0x438] ss:$44 sps:$4 sm:$0xff]  }
  0xd6   :  { %v110_v17 = vpop.f32.mrf.mxu0 }
  0xd7   :  { %v111_v18 = vadd.f32 %v110_v17, %v47_v15  ;;  %v3230_v15 = vld [vmem:[#allocation3 + $0x384] ss:$44 sps:$4 sm:$0xff]   ;;  %v3228_v17 = vld [vmem:[#allocation3 + $0x380] ss:$44 sps:$4 sm:$0xff]  }
  0xd8   :  { %v112_v19 = vpop.f32.mrf.mxu0 }
  0xd9   :  { %v113_v20 = vadd.f32 %v112_v19, %v51_v16  ;;  %v117_v21 = vmax.f32 %v111_v18, 0.0  ;;  %v3233_v16 = vld [vmem:[#allocation3 + $0x38c] ss:$44 sps:$4 sm:$0xff]   ;;  %v3231_v18 = vld [vmem:[#allocation3 + $0x388] ss:$44 sps:$4 sm:$0xff]  }
  0xda   :  { %v114_v22 = vpop.f32.mrf.mxu0  ;;  %v3236_v19 = vld [vmem:[#allocation3 + $0x32c] ss:$44 sps:$4 sm:$0xff]  }
  0xdb   :  { %v118_v23 = vmax.f32 %v113_v20, 0.0  ;;  %v3422_v28 = vpack.c.bf16 %v117_v21, %v117_v21  ;;  %v3239_v20 = vld [vmem:[#allocation3 + $0x334] ss:$44 sps:$4 sm:$0xff]   ;;  %v3237_v22 = vld [vmem:[#allocation3 + $0x330] ss:$44 sps:$4 sm:$0xff]  }
  0xdc   :  { %v115_v24 = vpop.f32.mrf.mxu0  ;;  %v3234_v21 = vld [vmem:[#allocation3 + $0x328] ss:$44 sps:$4 sm:$0xff]  }
  0xdd   :  { %v3420_v25 = vpack.c.bf16 %v118_v23, %v118_v23  ;;  %v3242_v23 = vld [vmem:[#allocation3 + $0x2d4] ss:$44 sps:$4 sm:$0xff]   ;;  %v3245_v24 = vld [vmem:[#allocation3 + $0x2dc] ss:$44 sps:$4 sm:$0xff]  }
  0xdf   :  { %1302 = vmatprep.mubr.bf16.mxu1 %v3420_v25  ;;  %1343 = vmatprep.mubr.bf16.mxu0 %v3420_v25 }
  0xe0   :  { %1303 = vmatmul.mubr.bf16.vlgmr.msra.gmra.mxu1 %v3422_v28  ;;  %1344 = vmatmul.mubr.bf16.vlgmr.msra.gmra.mxu0 %v3422_v28 }
  0xe1   :  { %1353 = vmatpush1.bf16.msra.mxu1 %v3150_v26  ;;  %1394 = vmatpush1.bf16.msra.mxu0 %v3153_v27  ;;  %v3240_v26 = vld [vmem:[#allocation3 + $0x2d0] ss:$44 sps:$4 sm:$0xff]   ;;  %v3243_v27 = vld [vmem:[#allocation3 + $0x2d8] ss:$44 sps:$4 sm:$0xff]  }
  0xe2   :  { %1384 = vmatprep.mubr.bf16.mxu1 %v3420_v25  ;;  %1425 = vmatprep.mubr.bf16.mxu0 %v3420_v25 }
  0xe3   :  { %1354 = vmatprep.subr.bf16.mxu1 %v3158_v29  ;;  %1395 = vmatprep.subr.bf16.mxu0 %v3161_v30  ;;  %v3248_v29 = vld [vmem:[#allocation3 + $0x28c] ss:$44 sps:$4 sm:$0xff]   ;;  %v3249_v30 = vld [vmem:[#allocation3 + $0x550] ss:$44 sps:$4 sm:$0xff]  }
  0xe5   :  { %1355 = vmatpush1.bf16.msra.mxu1 %v3156_v31  ;;  %1396 = vmatpush1.bf16.msra.mxu0 %v3159_v32  ;;  %v3246_v31 = vld [vmem:[#allocation3 + $0x288] ss:$44 sps:$4 sm:$0xff]   ;;  %v3250_v32 = vld [vmem:[#allocation3 + $0x290] ss:$44 sps:$4 sm:$0xff]  }
  0xe6   :  { %1356 = vmatprep.subr.bf16.mxu1 %v3164_v33  ;;  %1397 = vmatprep.subr.bf16.mxu0 %v3167_v34  ;;  %v3253_v33 = vld [vmem:[#allocation3 + $0x234] ss:$44 sps:$4 sm:$0xff]   ;;  %v3254_v34 = vld [vmem:[#allocation3 + $0x4f8] ss:$44 sps:$4 sm:$0xff]  }
  0xe9   :  { %1357 = vmatpush1.bf16.msra.mxu1 %v3162_v35  ;;  %1398 = vmatpush1.bf16.msra.mxu0 %v3165_v36  ;;  %v3251_v35 = vld [vmem:[#allocation3 + $0x230] ss:$44 sps:$4 sm:$0xff]   ;;  %v3255_v36 = vld [vmem:[#allocation3 + $0x238] ss:$44 sps:$4 sm:$0xff]  }
  0xea   :  { %1358 = vmatprep.subr.bf16.mxu1 %v3170_v37  ;;  %1399 = vmatprep.subr.bf16.mxu0 %v3173_v38  ;;  %v3258_v37 = vld [vmem:[#allocation3 + $0x1dc] ss:$44 sps:$4 sm:$0xff]   ;;  %v3259_v38 = vld [vmem:[#allocation3 + $0x4a0] ss:$44 sps:$4 sm:$0xff]  }
  0xed   :  { %1359 = vmatpush1.bf16.msra.mxu1 %v3168_v39  ;;  %1400 = vmatpush1.bf16.msra.mxu0 %v3171_v40  ;;  %v3256_v39 = vld [vmem:[#allocation3 + $0x1d8] ss:$44 sps:$4 sm:$0xff]   ;;  %v3260_v40 = vld [vmem:[#allocation3 + $0x1e0] ss:$44 sps:$4 sm:$0xff]  }
  0xee   :  { %1360 = vmatprep.subr.bf16.mxu1 %v3176_v41  ;;  %1401 = vmatprep.subr.bf16.mxu0 %v3179_v42  ;;  %v3263_v41 = vld [vmem:[#allocation3 + $0x184] ss:$44 sps:$4 sm:$0xff]   ;;  %v3264_v42 = vld [vmem:[#allocation3 + $0x448] ss:$44 sps:$4 sm:$0xff]  }
  0xf1   :  { %1361 = vmatpush1.bf16.msra.mxu1 %v3174_v43  ;;  %1402 = vmatpush1.bf16.msra.mxu0 %v3177_v44  ;;  %v3261_v43 = vld [vmem:[#allocation3 + $0x180] ss:$44 sps:$4 sm:$0xff]   ;;  %v3265_v44 = vld [vmem:[#allocation3 + $0x188] ss:$44 sps:$4 sm:$0xff]  }
  0xf2   :  { %1362 = vmatprep.subr.bf16.mxu1 %v3182_v45  ;;  %1403 = vmatprep.subr.bf16.mxu0 %v3185_v46  ;;  %v3268_v45 = vld [vmem:[#allocation3 + $0x12c] ss:$44 sps:$4 sm:$0xff]   ;;  %v3266_v46 = vld [vmem:[#allocation3 + $0x128] ss:$44 sps:$4 sm:$0xff]  }
  0xf5   :  { %1363 = vmatpush1.bf16.msra.mxu1 %v3180_v47  ;;  %1404 = vmatpush1.bf16.msra.mxu0 %v3183_v48  ;;  %v3270_v47 = vld [vmem:[#allocation3 + $0x130] ss:$44 sps:$4 sm:$0xff]   ;;  %v3273_v48 = vld [vmem:[#allocation3 + $0xd4] ss:$44 sps:$4 sm:$0xff]  }
  0xf6   :  { %1364 = vmatprep.subr.bf16.mxu1 %v3188_v49  ;;  %1405 = vmatprep.subr.bf16.mxu0 %v3191_v50  ;;  %v3274_v49 = vld [vmem:[#allocation3 + $0x398] ss:$44 sps:$4 sm:$0xff]   ;;  %v3271_v50 = vld [vmem:[#allocation3 + $0xd0] ss:$44 sps:$4 sm:$0xff]  }
  0xf9   :  { %1365 = vmatpush1.bf16.msra.mxu1 %v3186_v51  ;;  %1406 = vmatpush1.bf16.msra.mxu0 %v3189_v52  ;;  %v3275_v51 = vld [vmem:[#allocation3 + $0xd8] ss:$44 sps:$4 sm:$0xff]   ;;  %v3278_v52 = vld [vmem:[#allocation3 + $0x7c] ss:$44 sps:$4 sm:$0xff]  }
  0xfa   :  { %1366 = vmatprep.subr.bf16.mxu1 %v3194_v53  ;;  %1407 = vmatprep.subr.bf16.mxu0 %v3197_v54  ;;  %v3279_v53 = vld [vmem:[#allocation3 + $0x340] ss:$44 sps:$4 sm:$0xff]   ;;  %v3276_v54 = vld [vmem:[#allocation3 + $0x78] ss:$44 sps:$4 sm:$0xff]  }
  0xfd   :  { %1367 = vmatpush1.bf16.msra.mxu1 %v3192_v55  ;;  %1408 = vmatpush1.bf16.msra.mxu0 %v3195_v56  ;;  %v3280_v55 = vld [vmem:[#allocation3 + $0x80] ss:$44 sps:$4 sm:$0xff]   ;;  %v3283_v56 = vld [vmem:[#allocation3 + $0x24] ss:$44 sps:$4 sm:$0xff]  }
  0xfe   :  { %1368 = vmatprep.subr.bf16.mxu1 %v3200_v57  ;;  %1409 = vmatprep.subr.bf16.mxu0 %v3203_v58  ;;  %v3284_v57 = vld [vmem:[#allocation3 + $0x2e8] ss:$44 sps:$4 sm:$0xff]   ;;  %v3281_v58 = vld [vmem:[#allocation3 + $0x20] ss:$44 sps:$4 sm:$0xff]  }
 0x101   :  { %1369 = vmatpush2.bf16.msra.mxu1 %v3198_v59  ;;  %1410 = vmatpush2.bf16.msra.mxu0 %v3201_v60  ;;  %v3285_v59 = vld [vmem:[#allocation3 + $0x28] ss:$44 sps:$4 sm:$0xff]   ;;  %v3288_v60 = vld [vmem:[#allocation3 + $0x54c] ss:$44 sps:$4 sm:$0xff]  }
 0x102   :  { %1370 = vmatprep.subr.bf16.mxu1 %v3206_v61  ;;  %1411 = vmatprep.subr.bf16.mxu0 %v3209_v62  ;;  %v3286_v61 = vld [vmem:[#allocation3 + $0x548] ss:$44 sps:$4 sm:$0xff]  }
 0x103   :  { %v3291_v62 = vld [vmem:[#allocation3 + $0x4f4] ss:$44 sps:$4 sm:$0xff]  }
 0x105   :  { %1371 = vmatpush2.bf16.msra.mxu1 %v3204_v63  ;;  %1412 = vmatpush2.bf16.msra.mxu0 %v3207_v0  ;;  %v3289_v63 = vld [vmem:[#allocation3 + $0x4f0] ss:$44 sps:$4 sm:$0xff]  }
 0x106   :  { %1372 = vmatprep.subr.bf16.mxu1 %v3212_v1  ;;  %1413 = vmatprep.subr.bf16.mxu0 %v3215_v2  ;;  %v3294_v0 = vld [vmem:[#allocation3 + $0x49c] ss:$44 sps:$4 sm:$0xff]   ;;  %v3292_v1 = vld [vmem:[#allocation3 + $0x498] ss:$44 sps:$4 sm:$0xff]  }
 0x107   :  { %v3297_v2 = vld [vmem:[#allocation3 + $0x444] ss:$44 sps:$4 sm:$0xff]  }
 0x109   :  { %1373 = vmatpush2.bf16.msra.mxu1 %v3210_v3  ;;  %1414 = vmatpush2.bf16.msra.mxu0 %v3213_v4  ;;  %v3295_v3 = vld [vmem:[#allocation3 + $0x440] ss:$44 sps:$4 sm:$0xff]  }
 0x10a   :  { %1374 = vmatprep.subr.bf16.mxu1 %v3218_v5  ;;  %1415 = vmatprep.subr.bf16.mxu0 %v3221_v6  ;;  %v3300_v4 = vld [vmem:[#allocation3 + $0x3ec] ss:$44 sps:$4 sm:$0xff]   ;;  %v3298_v5 = vld [vmem:[#allocation3 + $0x3e8] ss:$44 sps:$4 sm:$0xff]  }
 0x10b   :  { %v3303_v6 = vld [vmem:[#allocation3 + $0x394] ss:$44 sps:$4 sm:$0xff]  }
 0x10d   :  { %1375 = vmatpush2.bf16.msra.mxu1 %v3216_v7  ;;  %1416 = vmatpush2.bf16.msra.mxu0 %v3219_v8  ;;  %v3301_v7 = vld [vmem:[#allocation3 + $0x390] ss:$44 sps:$4 sm:$0xff]  }
 0x10e   :  { %1376 = vmatprep.subr.bf16.mxu1 %v3224_v9  ;;  %1417 = vmatprep.subr.bf16.mxu0 %v3227_v11  ;;  %v3306_v8 = vld [vmem:[#allocation3 + $0x33c] ss:$44 sps:$4 sm:$0xff]   ;;  %v3304_v9 = vld [vmem:[#allocation3 + $0x338] ss:$44 sps:$4 sm:$0xff]  }
 0x10f   :  { %v3309_v11 = vld [vmem:[#allocation3 + $0x2e4] ss:$44 sps:$4 sm:$0xff]  }
 0x111   :  { %1377 = vmatpush2.bf16.msra.mxu1 %v3222_v12  ;;  %1418 = vmatpush2.bf16.msra.mxu0 %v3225_v14  ;;  %v3307_v12 = vld [vmem:[#allocation3 + $0x2e0] ss:$44 sps:$4 sm:$0xff]  }
 0x112   :  { %1378 = vmatprep.subr.bf16.mxu1 %v3230_v15  ;;  %1419 = vmatprep.subr.bf16.mxu0 %v3233_v16  ;;  %v1727_v14 = vld [vmem:[%s3728_s3 + $0x78] sm:$0xff]  ;;  %v1726_v15 = vld [vmem:[%s3728_s3 + $0x70] sm:$0xff] }
 0x113   :  { %v313_v16 = vld [vmem:[#allocation3 + $0x580] sm:$0x11] }
 0x115   :  { %1379 = vmatpush2.bf16.msra.mxu1 %v3228_v17  ;;  %1420 = vmatpush2.bf16.msra.mxu0 %v3231_v18  ;;  %v314_v17 = vld [vmem:[#allocation3 + $0x588] sm:$0x11]  ;;  %v1725_v18 = vld [vmem:[%s3728_s3 + $0x68] sm:$0xff] }
 0x116   :  { %1380 = vmatprep.subr.bf16.mxu1 %v3236_v19  ;;  %1421 = vmatprep.subr.bf16.mxu0 %v3239_v20  ;;  %v319_v19 = vunpack.c.l.bf16 %v313_v16  ;;  %v321_v20 = vunpack.c.l.bf16 %v314_v17 }
 0x119   :  { %1381 = vmatpush2.bf16.msra.mxu1 %v3234_v21  ;;  %1422 = vmatpush2.bf16.msra.mxu0 %v3237_v22  ;;  %v320_v21 = vunpack.c.h.bf16 %v313_v16  ;;  %v322_v22 = vunpack.c.h.bf16 %v314_v17 }
 0x11a   :  { %1382 = vmatprep.subr.bf16.mxu1 %v3242_v23  ;;  %1423 = vmatprep.subr.bf16.mxu0 %v3245_v24  ;;  %v1723_v23 = vld [vmem:[%s3728_s3 + $0x58] sm:$0xff]  ;;  %v333_v24 = vrot.slane %v319_v19, %v3416_v13 }
 0x11b   :  { %v318_v19 = vld [vmem:[#allocation3 + $0x5a8] sm:$0x1] }
 0x11d   :  { %1383 = vmatpush2.bf16.msra.mxu1 %v3240_v26  ;;  %1424 = vmatpush2.bf16.msra.mxu0 %v3243_v27  ;;  %v341_v26 = vrot.slane %v321_v20, %v3416_v13  ;;  %v337_v27 = vrot.slane %v320_v21, %v3416_v13  ;;  %v1719_v20 = vld [vmem:[%s3728_s3 + $0x38] sm:$0xff]  ;;  %v329_v21 = vunpack.c.l.bf16 %v318_v19 }
 0x11e   :  { %1434 = vmatprep.subr.bf16.mxu1 %v3248_v29  ;;  %2823 = vmatprep.subr.bf16.mxu0 %v3249_v30  ;;  %v345_v29 = vrot.slane %v322_v22, %v3416_v13 }
 0x120   :  { %1385 = vmatmul.mubr.bf16.vlgmr.msra.gmra.mxu1 %v3422_v28  ;;  %1426 = vmatmul.mubr.bf16.vlgmr.msra.gmra.mxu0 %v3422_v28 }
 0x121   :  { %1435 = vmatpush1.bf16.msra.mxu1 %v3246_v31  ;;  %1466 = vmatprep.mubr.bf16.mxu1 %v3420_v25 }
 0x122   :  { %2824 = vmatpush3.bf16.msra.mxu0 %v3250_v32  ;;  %1507 = vmatprep.mubr.bf16.mxu0 %v3420_v25  ;;  %v3269_v25 = vld [vmem:[#allocation3 + $0x3f0] ss:$44 sps:$4 sm:$0xff]   ;;  %v1722_v32 = vld [vmem:[%s3728_s3 + $0x50] sm:$0xff] }
 0x123   :  { %1436 = vmatprep.subr.bf16.mxu1 %v3253_v33  ;;  %2825 = vmatprep.subr.bf16.mxu0 %v3254_v34 }
 0x125   :  { %1437 = vmatpush1.bf16.msra.mxu1 %v3251_v35 }
 0x126   :  { %2826 = vmatpush3.bf16.msra.mxu0 %v3255_v36  ;;  %1438 = vmatprep.subr.bf16.mxu1 %v3258_v37  ;;  %v1721_v37 = vld [vmem:[%s3728_s3 + $0x48] sm:$0xff] }
 0x127   :  { %2827 = vmatprep.subr.bf16.mxu0 %v3259_v38 }
 0x129   :  { %1439 = vmatpush1.bf16.msra.mxu1 %v3256_v39 }
 0x12a   :  { %2828 = vmatpush3.bf16.msra.mxu0 %v3260_v40  ;;  %1440 = vmatprep.subr.bf16.mxu1 %v3263_v41 }
 0x12b   :  { %2829 = vmatprep.subr.bf16.mxu0 %v3264_v42 }
 0x12d   :  { %1441 = vmatpush1.bf16.msra.mxu1 %v3261_v43 }
 0x12e   :  { %2830 = vmatpush3.bf16.msra.mxu0 %v3265_v44  ;;  %1442 = vmatprep.subr.bf16.mxu1 %v3268_v45  ;;  %v1720_v44 = vld [vmem:[%s3728_s3 + $0x40] sm:$0xff] }
 0x12f   :  { %2831 = vmatprep.subr.bf16.mxu0 %v3269_v25 }
 0x131   :  { %1443 = vmatpush1.bf16.msra.mxu1 %v3266_v46 }
 0x132   :  { %2832 = vmatpush3.bf16.msra.mxu0 %v3270_v47  ;;  %1444 = vmatprep.subr.bf16.mxu1 %v3273_v48  ;;  %v1957_v48 = vld [vmem:[%s3728_s3 + $0xb8] sm:$0xff] }
 0x133   :  { %2833 = vmatprep.subr.bf16.mxu0 %v3274_v49  ;;  %v1956_v49 = vld [vmem:[%s3728_s3 + $0xb0] sm:$0xff] }
 0x135   :  { %1445 = vmatpush1.bf16.msra.mxu1 %v3271_v50  ;;  %v315_v50 = vld [vmem:[#allocation3 + $0x590] sm:$0x11] }
 0x136   :  { %2834 = vmatpush3.bf16.msra.mxu0 %v3275_v51  ;;  %1446 = vmatprep.subr.bf16.mxu1 %v3278_v52  ;;  %v316_v51 = vld [vmem:[#allocation3 + $0x598] sm:$0x11] }
 0x137   :  { %2835 = vmatprep.subr.bf16.mxu0 %v3279_v53  ;;  %v1955_v52 = vld [vmem:[%s3728_s3 + $0xa8] sm:$0xff]  ;;  %v323_v53 = vunpack.c.l.bf16 %v315_v50 }
 0x139   :  { %1447 = vmatpush1.bf16.msra.mxu1 %v3276_v54  ;;  %v325_v54 = vunpack.c.l.bf16 %v316_v51 }
 0x13a   :  { %2836 = vmatpush3.bf16.msra.mxu0 %v3280_v55  ;;  %1448 = vmatprep.subr.bf16.mxu1 %v3283_v56  ;;  %v1954_v55 = vld [vmem:[%s3728_s3 + $0xa0] sm:$0xff]  ;;  %v324_v56 = vunpack.c.h.bf16 %v315_v50 }
 0x13b   :  { %2837 = vmatprep.subr.bf16.mxu0 %v3284_v57  ;;  %v326_v57 = vunpack.c.h.bf16 %v316_v51 }
 0x13d   :  { %1449 = vmatpush1.bf16.msra.mxu1 %v3281_v58  ;;  %v1953_v58 = vld [vmem:[%s3728_s3 + $0x98] sm:$0xff] }
 0x13e   :  { %2838 = vmatpush3.bf16.msra.mxu0 %v3285_v59  ;;  %1450 = vmatprep.subr.bf16.mxu1 %v3288_v60  ;;  %v349_v59 = vrot.slane %v323_v53, %v3416_v13  ;;  %v357_v60 = vrot.slane %v325_v54, %v3416_v13 }
 0x13f   :  { %2917 = vmatprep.subr.mxu0 %v1727_v14 }
 0x141   :  { %1508 = vmatmul.mubr.bf16.vlgmr.msra.gmra.mxu0 %v3422_v28  ;;  %1451 = vmatpush2.bf16.msra.mxu1 %v3286_v61  ;;  %v1952_v61 = vld [vmem:[%s3728_s3 + $0x90] sm:$0xff] }
 0x142   :  { %1452 = vmatprep.subr.bf16.mxu1 %v3291_v62  ;;  %2918 = vmatpush3.msra.mxu0 %v1727_v14  ;;  %v1951_v62 = vld [vmem:[%s3728_s3 + $0x88] sm:$0xff] }
 0x143   :  { %2919 = vmatprep.subr.mxu0 %v1726_v15 }
 0x144   :  { %2920 = vmatpush3.msra.mxu0 %v1726_v15 }
 0x145   :  { %1453 = vmatpush2.bf16.msra.mxu1 %v3289_v63  ;;  %2921 = vmatprep.subr.mxu0 %v1725_v18  ;;  %v353_v63 = vrot.slane %v324_v56, %v3416_v13  ;;  %v1717_v56 = vld [vmem:[%s3728_s3 + $0x28] sm:$0xff] }
 0x146   :  { %1454 = vmatprep.subr.bf16.mxu1 %v3294_v0  ;;  %2922 = vmatpush3.msra.mxu0 %v1725_v18  ;;  %v361_v0 = vrot.slane %v326_v57, %v3416_v13  ;;  %v1716_v57 = vld [vmem:[%s3728_s3 + $0x20] sm:$0xff] }
 0x149   :  { %1455 = vmatpush2.bf16.msra.mxu1 %v3292_v1 }
 0x14a   :  { %1456 = vmatprep.subr.bf16.mxu1 %v3297_v2 }
 0x14d   :  { %1457 = vmatpush2.bf16.msra.mxu1 %v3295_v3 }
 0x14e   :  { %1458 = vmatprep.subr.bf16.mxu1 %v3300_v4 }
 0x151   :  { %1459 = vmatpush2.bf16.msra.mxu1 %v3298_v5 }
 0x152   :  { %1460 = vmatprep.subr.bf16.mxu1 %v3303_v6 }
 0x155   :  { %1461 = vmatpush2.bf16.msra.mxu1 %v3301_v7 }
 0x156   :  { %1462 = vmatprep.subr.bf16.mxu1 %v3306_v8 }
 0x159   :  { %1463 = vmatpush2.bf16.msra.mxu1 %v3304_v9 }
 0x15a   :  { %1464 = vmatprep.subr.bf16.mxu1 %v3309_v11 }
 0x15d   :  { %1465 = vmatpush2.bf16.msra.mxu1 %v3307_v12  ;;  %v1950_v12 = vld [vmem:[%s3728_s3 + $0x80] sm:$0xff] }
 0x15e   :  { %2967 = vmatprep.subr.mxu1 %v1957_v48 }
 0x160   :  { %1467 = vmatmul.mubr.bf16.vlgmr.msra.gmra.mxu1 %v3422_v28  ;;  %v1724_v28 = vld [vmem:[%s3728_s3 + $0x60] sm:$0xff] }
 0x161   :  { %2923 = vmatprep.subr.mxu0 %v1724_v28  ;;  %2968 = vmatpush3.msra.mxu1 %v1957_v48 }
 0x162   :  { %2924 = vmatpush3.msra.mxu0 %v1724_v28  ;;  %2969 = vmatprep.subr.mxu1 %v1956_v49 }
 0x163   :  { %2925 = vmatprep.subr.mxu0 %v1723_v23  ;;  %2970 = vmatpush3.msra.mxu1 %v1956_v49 }
 0x164   :  { %2926 = vmatpush3.msra.mxu0 %v1723_v23  ;;  %2971 = vmatprep.subr.mxu1 %v1955_v52  ;;  %v373_v23 = vrot.slane %v329_v21, %v3416_v13 }
 0x165   :  { %2927 = vmatprep.subr.mxu0 %v1722_v32  ;;  %2972 = vmatpush3.msra.mxu1 %v1955_v52  ;;  %v1718_v52 = vld [vmem:[%s3728_s3 + $0x30] sm:$0xff] }
 0x166   :  { %2928 = vmatpush3.msra.mxu0 %v1722_v32  ;;  %2973 = vmatprep.subr.mxu1 %v1954_v55  ;;  %v317_v32 = vld [vmem:[#allocation3 + $0x5a0] sm:$0x11] }
 0x167   :  { %2929 = vmatprep.subr.mxu0 %v1721_v37  ;;  %2974 = vmatpush3.msra.mxu1 %v1954_v55 }
 0x168   :  { %2930 = vmatpush3.msra.mxu0 %v1721_v37  ;;  %2975 = vmatprep.subr.mxu1 %v1953_v58 }
 0x169   :  { %2931 = vmatprep.subr.mxu0 %v1720_v44  ;;  %2976 = vmatpush3.msra.mxu1 %v1953_v58  ;;  %v1715_v58 = vld [vmem:[%s3728_s3 + $0x18] sm:$0xff] }
 0x16a   :  { %2932 = vmatpush3.msra.mxu0 %v1720_v44  ;;  %2977 = vmatprep.subr.mxu1 %v1952_v61 }
 0x16b   :  { %2978 = vmatpush3.msra.mxu1 %v1952_v61  ;;  %2942 = vmatprep.subr.mxu0 %v1719_v20  ;;  %v1712_v61 = vld [vmem:[%s3728_s3] sm:$0xff] }
 0x16c   :  { %2979 = vmatprep.subr.mxu1 %v1951_v62 }
 0x16d   :  { %2980 = vmatpush3.msra.mxu1 %v1951_v62 }
 0x16e   :  { %2981 = vmatprep.subr.mxu1 %v1950_v12 }
 0x16f   :  { %2982 = vmatpush3.msra.mxu1 %v1950_v12 }
 0x1a0   :  { %v1304_v30 = vpop.f32.mrf.mxu1  ;;  %v1345_v31 = vpop.f32.mrf.mxu0 }
 0x1a1   :  { %v1305_v33 = vadd.f32 %v1304_v30, %v333_v24  ;;  %v1346_v34 = vadd.f32 %v1345_v31, %v341_v26 }
 0x1a2   :  { %v1306_v35 = vpop.f32.mrf.mxu1  ;;  %v1347_v36 = vpop.f32.mrf.mxu0 }
 0x1a3   :  { %v1515_v38 = vmax.f32 %v1305_v33, 0.0  ;;  %v1517_v39 = vmax.f32 %v1346_v34, 0.0  ;;  %v1307_v40 = vadd.f32 %v1306_v35, %v337_v27  ;;  %v1348_v41 = vadd.f32 %v1347_v36, %v345_v29 }
 0x1a4   :  { %v1308_v42 = vpop.f32.mrf.mxu1  ;;  %v1349_v43 = vpop.f32.mrf.mxu0  ;;  %v327_v35 = vunpack.c.l.bf16 %v317_v32 }
 0x1a5   :  { %1527 = vst.msk [vmem:[#allocation2] sm:$0x3] %vm1526_vm1, %v1515_v38  ;;  %1539 = vst.msk [vmem:[#allocation2 + $0x8] sm:$0x3] %vm1526_vm1, %v1517_v39  ;;  %v1516_v45 = vmax.f32 %v1307_v40, 0.0  ;;  %v1518_v25 = vmax.f32 %v1348_v41, 0.0  ;;  %1541 = vrot.lane.b32.xlu1 %v1517_v39, %s3360_s25  ;;  %1529 = vrot.lane.b32.xlu0 %v1515_v38, %s3360_s25  ;;  %v328_v38 = vunpack.c.h.bf16 %v317_v32 }
 0x1a6   :  { %v1309_v46 = vpop.f32.mrf.mxu1  ;;  %v1350_v47 = vpop.f32.mrf.mxu0  ;;  %v365_v39 = vrot.slane %v327_v35, %v3416_v13 }
 0x1a7   :  { %1533 = vst.msk [vmem:[#allocation2 + $0x4] sm:$0x3] %vm1526_vm1, %v1516_v45  ;;  %1545 = vst.msk [vmem:[#allocation2 + $0xc] sm:$0x3] %vm1526_vm1, %v1518_v25  ;;  %v369_v40 = vrot.slane %v328_v38, %v3416_v13 }
 0x1a9   :  { %1547 = vrot.lane.b32.xlu1 %v1518_v25, %s3360_s25  ;;  %1535 = vrot.lane.b32.xlu0 %v1516_v45, %s3360_s25 }
 0x1e0   :  { %v1386_v1 = vpop.f32.mrf.mxu1  ;;  %v1427_v2 = vpop.f32.mrf.mxu0 }
 0x1e1   :  { %v1387_v3 = vadd.f32 %v1386_v1, %v349_v59  ;;  %v1428_v4 = vadd.f32 %v1427_v2, %v357_v60  ;;  %v1714_v59 = vld [vmem:[%s3728_s3 + $0x10] sm:$0xff]  ;;  %v1713_v60 = vld [vmem:[%s3728_s3 + $0x8] sm:$0xff] }
 0x1e2   :  { %v1388_v5 = vpop.f32.mrf.mxu1  ;;  %v1429_v6 = vpop.f32.mrf.mxu0 }
 0x1e3   :  { %v1519_v7 = vmax.f32 %v1387_v3, 0.0  ;;  %v1521_v8 = vmax.f32 %v1428_v4, 0.0  ;;  %v1389_v9 = vadd.f32 %v1388_v5, %v353_v63  ;;  %v1430_v11 = vadd.f32 %v1429_v6, %v361_v0 }
 0x1e4   :  { %v1390_v14 = vpop.f32.mrf.mxu1  ;;  %v1431_v15 = vpop.f32.mrf.mxu0 }
 0x1e5   :  { %1551 = vst.msk [vmem:[#allocation2 + $0x10] sm:$0x3] %vm1526_vm1, %v1519_v7  ;;  %1563 = vst.msk [vmem:[#allocation2 + $0x18] sm:$0x3] %vm1526_vm1, %v1521_v8  ;;  %v1520_v16 = vmax.f32 %v1389_v9, 0.0  ;;  %v1522_v17 = vmax.f32 %v1430_v11, 0.0  ;;  %1553 = vrot.lane.b32.xlu0 %v1519_v7, %s3360_s25 }
 0x1e6   :  { %v1391_v18 = vpop.f32.mrf.mxu1  ;;  %v1432_v28 = vpop.f32.mrf.mxu0 }
 0x1e7   :  { %1557 = vst.msk [vmem:[#allocation2 + $0x14] sm:$0x3] %vm1526_vm1, %v1520_v16  ;;  %1569 = vst.msk [vmem:[#allocation2 + $0x1c] sm:$0x3] %vm1526_vm1, %v1522_v17  ;;  %1559 = vrot.lane.b32.xlu1 %v1520_v16, %s3360_s25 }
 0x1e9   :  { %1565 = vrot.lane.b32.xlu0 %v1521_v8, %s3360_s25 }
 0x1eb   :  { %1571 = vrot.lane.b32.xlu1 %v1522_v17, %s3360_s25 }
 0x201   :  { %v2839_v22 = vpop.f32.mrf.mxu0 }
 0x203   :  { %v2840_v24 = vpop.f32.mrf.mxu0 }
 0x204   :  { %v2841_v26 = vadd.f32 %v2840_v24, %v2839_v22  ;;  %v3579_v24 = vadd.s32 40, %v3410_v10 }
 0x205   :  { %v2842_v27 = vpop.f32.mrf.mxu0 }
 0x206   :  { %v1510_v29 = vadd.f32 %v2841_v26, %v373_v23  ;;  %vm1617_vm6 = vcmp.lt.s32.totalorder %v3579_v24, 42  ;;  %v2822_v24 = vld [vmem:[%s3729_s4 + $0x60] ss:$0 sm:$0xff] }
 0x207   :  { %v2843_v30 = vpop.f32.mrf.mxu0 }
 0x208   :  { %v1525_v31 = vmax.f32 %v1510_v29, 0.0 }
 0x20a   :  { %1587 = vst.msk [vmem:[#allocation2 + $0x28] sm:$0x3] %vm1526_vm1, %v1525_v31  ;;  %1589 = vrot.lane.b32.xlu0 %v1525_v31, %s3360_s25 }
 0x217   :  { %v1542_v33 = vpop.permute.xlu1 %1541  ;;  %v1530_v34 = vpop.permute.xlu0 %1529 }
 0x218   :  { %1544 = vst.msk [vmem:[#allocation2 + $0xa] sm:$0x3] %vm1526_vm1, %v1542_v33  ;;  %1532 = vst.msk [vmem:[#allocation2 + $0x2] sm:$0x3] %vm1526_vm1, %v1530_v34 }
 0x21b   :  { %v1548_v36 = vpop.permute.xlu1 %1547  ;;  %v1536_v37 = vpop.permute.xlu0 %1535 }
 0x21c   :  { %1550 = vst.msk [vmem:[#allocation2 + $0xe] sm:$0x3] %vm1526_vm1, %v1548_v36  ;;  %1538 = vst.msk [vmem:[#allocation2 + $0x6] sm:$0x3] %vm1526_vm1, %v1536_v37 }
 0x220   :  { %v1468_v41 = vpop.f32.mrf.mxu1 }
 0x221   :  { %v1469_v42 = vadd.f32 %v1468_v41, %v365_v39 }
 0x222   :  { %v1470_v43 = vpop.f32.mrf.mxu1 }
 0x223   :  { %v1523_v44 = vmax.f32 %v1469_v42, 0.0  ;;  %v1471_v45 = vadd.f32 %v1470_v43, %v369_v40  ;;  %v3520_v25 = vld [vmem:[#allocation2] sm:$0xff]  ;;  %v1594_v46 = vld [vmem:[#allocation2 + $0x8] sm:$0xff]  ;;  %v2169_v42 = vld [vmem:[%s3729_s4 + $0x38] sm:$0xff] }
 0x224   :  { %v1472_v47 = vpop.f32.mrf.mxu1  ;;  %v1619_v48 = vrot.slane %v3520_v25, 4  ;;  %v1690_v49 = vrot.slane %v3520_v25, 2  ;;  %2933 = vmatprep.mubr.msk.f32.mxu0 %vm1728_vm2, %v3520_v25  ;;  %v1621_v13 = vrot.slane %v1594_v46, 4  ;;  %v1691_v50 = vrot.slane %v1594_v46, 2  ;;  %v2168_v43 = vld [vmem:[%s3729_s4 + $0x30] sm:$0xff]  ;;  %v2165_v25 = vld [vmem:[%s3729_s4 + $0x18] sm:$0xff] }
 0x225   :  { %1575 = vst.msk [vmem:[#allocation2 + $0x20] sm:$0x3] %vm1526_vm1, %v1523_v44  ;;  %v1524_v51 = vmax.f32 %v1471_v45, 0.0  ;;  %1577 = vrot.lane.b32.xlu1 %v1523_v44, %s3360_s25  ;;  %2934 = vmatmul.mubr.msk.f32.vlgmr.msra.gmra.mxu0 %vm1728_vm2, %v1594_v46  ;;  %v2167_v44 = vld [vmem:[%s3729_s4 + $0x28] sm:$0xff]  ;;  %v2166_v45 = vld [vmem:[%s3729_s4 + $0x20] sm:$0xff]  ;;  %v2394_v46 = vld [vmem:[%s3729_s4 + $0x58] sm:$0xff] }
 0x226   :  { %v1473_v53 = vpop.f32.mrf.mxu1  ;;  %v1692_v54 = vsel %vm1649_vm3, %v1690_v49, %v1691_v50  ;;  %2943 = vmatpush3.msra.mxu0 %v1719_v20  ;;  %v1626_v55 = vsel %vm1618_vm4, %v1621_v13, %v1619_v48  ;;  %3009 = vmatprep.subr.mxu1 %v2165_v25  ;;  %v2164_v47 = vld [vmem:[%s3729_s4 + $0x10] sm:$0xff]  ;;  %v2162_v49 = vld [vmem:[%s3729_s4] sm:$0xff] }
 0x227   :  { %1581 = vst.msk [vmem:[#allocation2 + $0x24] sm:$0x3] %vm1526_vm1, %v1524_v51  ;;  %1583 = vrot.lane.b32.xlu0 %v1524_v51, %s3360_s25  ;;  %2983 = vmatprep.mubr.msk.f32.mxu1 %vm1728_vm2, %v1692_v54  ;;  %v1651_v9 = vrot.slane %v1626_v55, 2 }
 0x228   :  { %2944 = vmatprep.subr.mxu0 %v1718_v52 }
 0x229   :  { %2945 = vmatpush3.msra.mxu0 %v1718_v52 }
 0x22a   :  { %2946 = vmatprep.subr.mxu0 %v1717_v56 }
 0x22b   :  { %2947 = vmatpush3.msra.mxu0 %v1717_v56 }
 0x22c   :  { %2948 = vmatprep.subr.mxu0 %v1716_v57 }
 0x22d   :  { %2949 = vmatpush3.msra.mxu0 %v1716_v57 }
 0x22e   :  { %2950 = vmatprep.subr.mxu0 %v1715_v58 }
 0x22f   :  { %2951 = vmatpush3.msra.mxu0 %v1715_v58 }
 0x230   :  { %2952 = vmatprep.subr.mxu0 %v1714_v59 }
 0x231   :  { %2953 = vmatpush3.msra.mxu0 %v1714_v59 }
 0x232   :  { %2954 = vmatprep.subr.mxu0 %v1713_v60 }
 0x233   :  { %2955 = vmatpush3.msra.mxu0 %v1713_v60  ;;  %v2803_v60 = vld [vmem:[%s3728_s3 + $0xc0] ss:$0 sm:$0xff] }
 0x234   :  { %2956 = vmatprep.subr.mxu0 %v1712_v61 }
 0x235   :  { %2957 = vmatpush3.msra.mxu0 %v1712_v61 }
 0x236   :  { %2992 = vmatprep.subr.mxu0 %v2169_v42 }
 0x257   :  { %v1554_v62 = vpop.permute.xlu0 %1553 }
 0x258   :  { %1556 = vst.msk [vmem:[#allocation2 + $0x12] sm:$0x3] %vm1526_vm1, %v1554_v62 }
 0x259   :  { %v1560_v63 = vpop.permute.xlu1 %1559 }
 0x25a   :  { %1562 = vst.msk [vmem:[#allocation2 + $0x16] sm:$0x3] %vm1526_vm1, %v1560_v63 }
 0x25b   :  { %v1566_v0 = vpop.permute.xlu0 %1565 }
 0x25c   :  { %1568 = vst.msk [vmem:[#allocation2 + $0x1a] sm:$0x3] %vm1526_vm1, %v1566_v0 }
 0x25d   :  { %v1572_v1 = vpop.permute.xlu1 %1571 }
 0x25e   :  { %1574 = vst.msk [vmem:[#allocation2 + $0x1e] sm:$0x3] %vm1526_vm1, %v1572_v1 }
 0x261   :  { %v1595_v2 = vld [vmem:[#allocation2 + $0x10] sm:$0xff] }
 0x262   :  { %v1622_v3 = vrot.slane %v1595_v2, 4  ;;  %v1693_v4 = vrot.slane %v1595_v2, 2  ;;  %2936 = vmatprep.mubr.msk.f32.mxu0 %vm1728_vm2, %v1595_v2 }
 0x264   :  { %v1627_v5 = vsel %vm1618_vm4, %v1622_v3, %v1621_v13  ;;  %v1694_v6 = vsel %vm1649_vm3, %v1691_v50, %v1693_v4 }
 0x265   :  { %v1653_v7 = vrot.slane %v1627_v5, 2  ;;  %2984 = vmatmul.mubr.msk.f32.vlgmr.msra.gmra.mxu1 %vm1728_vm2, %v1694_v6  ;;  %v1596_v8 = vld [vmem:[#allocation2 + $0x18] sm:$0xff] }
 0x266   :  { %v1695_v11 = vrot.slane %v1596_v8, 2  ;;  %2937 = vmatmul.mubr.msk.f32.gmra.mxu0 %vm1728_vm2, %v1596_v8  ;;  %v1623_v21 = vrot.slane %v1596_v8, 4  ;;  %3010 = vmatpush3.msra.mxu1 %v2165_v25 }
 0x267   :  { %v1654_v12 = vsel %vm1649_vm3, %v1651_v9, %v1653_v7  ;;  %3011 = vmatprep.subr.mxu1 %v2164_v47 }
 0x268   :  { %v1696_v14 = vsel %vm1649_vm3, %v1693_v4, %v1695_v11  ;;  %v1628_v22 = vsel %vm1618_vm4, %v1623_v21, %v1622_v3  ;;  %3012 = vmatpush3.msra.mxu1 %v2164_v47 }
 0x269   :  { %2986 = vmatprep.mubr.msk.f32.mxu1 %vm1728_vm2, %v1696_v14  ;;  %v1655_v31 = vrot.slane %v1628_v22, 2  ;;  %v2393_v22 = vld [vmem:[%s3729_s4 + $0x50] sm:$0xff] }
 0x26b   :  { %v1656_v37 = vsel %vm1649_vm3, %v1653_v7, %v1655_v31 }
 0x27c   :  { %v1590_v15 = vpop.permute.xlu0 %1589 }
 0x27d   :  { %1592 = vst.msk [vmem:[#allocation2 + $0x2a] sm:$0x3] %vm1526_vm1, %v1590_v15 }
 0x284   :  { %v1598_v16 = vld [vmem:[#allocation2 + $0x28] sm:$0xf] }
 0x285   :  { %v1620_v17 = vsel %vm1618_vm4, %v1619_v48, %v1598_v16  ;;  %v2163_v48 = vld [vmem:[%s3729_s4 + $0x8] sm:$0xff] }
 0x286   :  { %v1650_v18 = vrot.slane %v1620_v17, 2  ;;  %v1625_v29 = vrot.slane %v1620_v17, 4  ;;  %3013 = vmatprep.subr.mxu1 %v2163_v48 }
 0x287   :  { %3014 = vmatpush3.msra.mxu1 %v2163_v48 }
 0x288   :  { %v1652_v28 = vsel %vm1649_vm3, %v1650_v18, %v1651_v9  ;;  %v1711_v39 = vsel %vm1617_vm6, %v1650_v18, 0.0  ;;  %3015 = vmatprep.subr.mxu1 %v2162_v49 }
 0x289   :  { %v1667_v30 = vsel %vm1606_vm5, %v1652_v28, 0.0  ;;  %3016 = vmatpush3.msra.mxu1 %v2162_v49 }
 0x297   :  { %v1578_v19 = vpop.permute.xlu1 %1577 }
 0x298   :  { %1580 = vst.msk [vmem:[#allocation2 + $0x22] sm:$0x3] %vm1526_vm1, %v1578_v19 }
 0x299   :  { %v1584_v20 = vpop.permute.xlu0 %1583 }
 0x29a   :  { %1586 = vst.msk [vmem:[#allocation2 + $0x26] sm:$0x3] %vm1526_vm1, %v1584_v20 }
 0x2a1   :  { %v1597_v23 = vld [vmem:[#allocation2 + $0x20] sm:$0xff] }
 0x2a2   :  { %v1624_v26 = vrot.slane %v1597_v23, 4  ;;  %v1697_v27 = vrot.slane %v1597_v23, 2  ;;  %2939 = vmatprep.mubr.msk.f32.mxu0 %vm1728_vm2, %v1597_v23 }
 0x2a3   :  { %2940 = vmatmul.mubr.msk.f32.gmra.mxu0 %vm1728_vm2, %v1598_v16 }
 0x2a4   :  { %2958 = vmatprep.mubr.msk.f32.mxu0 %vm1728_vm2, %v1667_v30  ;;  %v1698_v32 = vsel %vm1649_vm3, %v1695_v11, %v1697_v27  ;;  %v1699_v33 = vsel %vm1649_vm3, %v1697_v27, %v1650_v18  ;;  %v1629_v34 = vsel %vm1618_vm4, %v1624_v26, %v1623_v21  ;;  %v1630_v35 = vsel %vm1618_vm4, %v1625_v29, %v1624_v26 }
 0x2a5   :  { %2987 = vmatmul.mubr.msk.f32.gmra.mxu1 %vm1728_vm2, %v1698_v32  ;;  %v1657_v36 = vrot.slane %v1629_v34, 2  ;;  %v1659_v38 = vrot.slane %v1630_v35, 2 }
 0x2a6   :  { %2989 = vmatprep.mubr.msk.f32.mxu1 %vm1728_vm2, %v1699_v33 }
 0x2a7   :  { %2959 = vmatmul.mubr.msk.f32.vlgmr.msra.gmra.mxu0 %vm1728_vm2, %v1654_v12  ;;  %v1658_v40 = vsel %vm1649_vm3, %v1655_v31, %v1657_v36  ;;  %v1660_v41 = vsel %vm1649_vm3, %v1657_v36, %v1659_v38  ;;  %v2392_v31 = vld [vmem:[%s3729_s4 + $0x48] sm:$0xff]  ;;  %v2391_v36 = vld [vmem:[%s3729_s4 + $0x40] sm:$0xff] }
 0x2a8   :  { %2961 = vmatprep.mubr.msk.f32.mxu0 %vm1728_vm2, %v1656_v37  ;;  %2993 = vmatpush3.msra.mxu0 %v2169_v42 }
 0x2a9   :  { %2990 = vmatmul.mubr.msk.f32.gmra.mxu1 %vm1728_vm2, %v1711_v39  ;;  %2994 = vmatprep.subr.mxu0 %v2168_v43 }
 0x2aa   :  { %2995 = vmatpush3.msra.mxu0 %v2168_v43 }
 0x2ab   :  { %2962 = vmatmul.mubr.msk.f32.gmra.mxu0 %vm1728_vm2, %v1658_v40  ;;  %2996 = vmatprep.subr.mxu0 %v2167_v44 }
 0x2ac   :  { %2964 = vmatprep.mubr.msk.f32.mxu0 %vm1728_vm2, %v1660_v41  ;;  %2997 = vmatpush3.msra.mxu0 %v2167_v44 }
 0x2ad   :  { %2998 = vmatprep.subr.mxu0 %v2166_v45 }
 0x2ae   :  { %2999 = vmatpush3.msra.mxu0 %v2166_v45 }
 0x2af   :  { %2965 = vmatmul.mubr.msk.f32.gmra.mxu0 %vm1728_vm2, %v1659_v38  ;;  %3026 = vmatprep.subr.mxu0 %v2394_v46 }
 0x2e5   :  { %v2935_v13 = vpop.f32.mrf.mxu0 }
 0x2e7   :  { %v1808_v50 = vpop.f32.mrf.mxu0 }
 0x325   :  { %v2985_v52 = vpop.f32.mrf.mxu1 }
 0x326   :  { %v2938_v51 = vpop.f32.mrf.mxu0 }
 0x327   :  { %v2042_v55 = vpop.f32.mrf.mxu1 }
 0x328   :  { %v1818_v53 = vpop.f32.mrf.mxu0 }
 0x363   :  { %v2941_v54 = vpop.f32.mrf.mxu0 }
 0x365   :  { %v1828_v56 = vpop.f32.mrf.mxu0  ;;  %v2988_v57 = vpop.f32.mrf.mxu1 }
 0x367   :  { %v2960_v58 = vpop.f32.mrf.mxu0  ;;  %v2052_v0 = vpop.f32.mrf.mxu1 }
 0x368   :  { %v1927_v59 = vadd.f32 %v2960_v58, %v2935_v13 }
 0x369   :  { %v1921_v61 = vpop.f32.mrf.mxu0  ;;  %v2991_v9 = vpop.f32.mrf.mxu1 }
 0x36a   :  { %v2072_v62 = vadd.f32 %v2985_v52, %v1927_v59  ;;  %v1922_v63 = vadd.f32 %v1921_v61, %v1808_v50 }
 0x36b   :  { %v2963_v1 = vpop.f32.mrf.mxu0  ;;  %v2062_v23 = vpop.f32.mrf.mxu1 }
 0x36c   :  { %v2083_v2 = vadd.f32 %v2803_v60, %v2072_v62  ;;  %v2071_v3 = vadd.f32 %v2042_v55, %v1922_v63  ;;  %v1937_v4 = vadd.f32 %v2963_v1, %v2938_v51 }
 0x36d   :  { %v1931_v5 = vpop.f32.mrf.mxu0 }
 0x36e   :  { %v2082_v6 = vadd.f32 %v2803_v60, %v2071_v3  ;;  %v2074_v7 = vadd.f32 %v2988_v57, %v1937_v4  ;;  %v1932_v8 = vadd.f32 %v1931_v5, %v1818_v53  ;;  %v2089_v12 = vmax.f32 %v2083_v2, 0.0 }
 0x36f   :  { %v2966_v11 = vpop.f32.mrf.mxu0 }
 0x370   :  { %v2088_v14 = vmax.f32 %v2082_v6, 0.0  ;;  %v2085_v15 = vadd.f32 %v2803_v60, %v2074_v7  ;;  %v2073_v16 = vadd.f32 %v2052_v0, %v1932_v8  ;;  %v1947_v17 = vadd.f32 %v2966_v11, %v2941_v54 }
 0x371   :  { %v1941_v18 = vpop.f32.mrf.mxu0  ;;  %v2096_v27 = vrot.slane %v2089_v12, 4  ;;  %v2141_v45 = vrot.slane %v2089_v12, 2 }
 0x372   :  { %v2094_v28 = vrot.slane %v2088_v14, 4  ;;  %v3634_v19 = vmax.f32 %v2085_v15, 0.0  ;;  %v2084_v20 = vadd.f32 %v2803_v60, %v2073_v16  ;;  %v1942_v21 = vadd.f32 %v1941_v18, %v1828_v56  ;;  %3000 = vmatprep.mubr.msk.f32.mxu0 %vm72_vm0, %v2088_v14 }
 0x373   :  { %v2076_v26 = vadd.f32 %v2991_v9, %v1947_v17  ;;  %3001 = vmatmul.mubr.msk.f32.vlgmr.msra.gmra.mxu0 %vm72_vm0, %v2089_v12  ;;  %v2140_v39 = vrot.slane %v2088_v14, 2 }
 0x374   :  { %v2090_v29 = vmax.f32 %v2084_v20, 0.0  ;;  %v2075_v30 = vadd.f32 %v2062_v23, %v1942_v21  ;;  %3027 = vmatpush3.msra.mxu0 %v2394_v46  ;;  %v2098_v33 = vrot.slane %v3634_v19, 4  ;;  %v2101_v37 = vsel %vm1618_vm4, %v2096_v27, %v2094_v28 }
 0x375   :  { %v2087_v32 = vadd.f32 %v2803_v60, %v2076_v26  ;;  %3028 = vmatprep.subr.mxu0 %v2393_v22  ;;  %v2113_v25 = vrot.slane %v2101_v37, 2  ;;  %v2142_v13 = vsel %vm1649_vm3, %v2140_v39, %v2141_v45  ;;  %v2145_v55 = vrot.slane %v3634_v19, 2 }
 0x376   :  { %v2097_v34 = vrot.slane %v2090_v29, 4  ;;  %v2086_v35 = vadd.f32 %v2803_v60, %v2075_v30  ;;  %3003 = vmatprep.mubr.msk.f32.mxu0 %vm72_vm0, %v2090_v29  ;;  %3029 = vmatpush3.msra.mxu0 %v2393_v22  ;;  %v2143_v43 = vrot.slane %v2090_v29, 2 }
 0x377   :  { %v2093_v38 = vmax.f32 %v2087_v32, 0.0  ;;  %3004 = vmatmul.mubr.msk.f32.gmra.mxu0 %vm72_vm0, %v3634_v19  ;;  %3030 = vmatprep.subr.mxu0 %v2392_v31 }
 0x378   :  { %v2092_v40 = vmax.f32 %v2086_v35, 0.0  ;;  %3031 = vmatpush3.msra.mxu0 %v2392_v31  ;;  %v2102_v41 = vsel %vm1618_vm4, %v2097_v34, %v2096_v27  ;;  %v2103_v42 = vsel %vm1618_vm4, %v2098_v33, %v2097_v34  ;;  %v2144_v57 = vsel %vm1649_vm3, %v2141_v45, %v2143_v43 }
 0x379   :  { %v2095_v44 = vsel %vm1618_vm4, %v2094_v28, %v2093_v38  ;;  %3032 = vmatprep.subr.mxu0 %v2391_v36  ;;  %v2115_v49 = vrot.slane %v2102_v41, 2  ;;  %v2117_v50 = vrot.slane %v2103_v42, 2  ;;  %v2146_v61 = vsel %vm1649_vm3, %v2143_v43, %v2145_v55 }
 0x37a   :  { %v2100_v46 = vrot.slane %v2095_v44, 4  ;;  %v2099_v47 = vrot.slane %v2092_v40, 4  ;;  %3006 = vmatprep.mubr.msk.f32.mxu0 %vm72_vm0, %v2092_v40  ;;  %v2112_v48 = vrot.slane %v2095_v44, 2  ;;  %3033 = vmatpush3.msra.mxu0 %v2391_v36  ;;  %v2147_v59 = vrot.slane %v2092_v40, 2 }
 0x37b   :  { %3007 = vmatmul.mubr.msk.f32.gmra.mxu0 %vm72_vm0, %v2093_v38  ;;  %v2116_v56 = vsel %vm1649_vm3, %v2113_v25, %v2115_v49  ;;  %v2118_v60 = vsel %vm1649_vm3, %v2115_v49, %v2117_v50 }
 0x37c   :  { %3034 = vmatprep.mubr.msk.f32.mxu0 %vm72_vm0, %v2142_v13  ;;  %v2114_v51 = vsel %vm1649_vm3, %v2112_v48, %v2113_v25  ;;  %v2104_v52 = vsel %vm1618_vm4, %v2099_v47, %v2098_v33  ;;  %v2105_v53 = vsel %vm1618_vm4, %v2100_v46, %v2099_v47  ;;  %v2148_v63 = vsel %vm1649_vm3, %v2145_v55, %v2147_v59 }
 0x37d   :  { %v2129_v54 = vsel %vm1606_vm5, %v2114_v51, 0.0  ;;  %v2119_v58 = vrot.slane %v2104_v52, 2  ;;  %v2121_v10 = vrot.slane %v2105_v53, 2  ;;  %v2149_v1 = vsel %vm1649_vm3, %v2147_v59, %v2112_v48 }
 0x37e   :  { %3017 = vmatprep.mubr.msk.f32.mxu1 %vm72_vm0, %v2129_v54  ;;  %v2161_v2 = vsel %vm1617_vm6, %v2112_v48, 0.0 }
 0x37f   :  { %3018 = vmatmul.mubr.msk.f32.vlgmr.msra.gmra.mxu1 %vm72_vm0, %v2116_v56  ;;  %3035 = vmatmul.mubr.msk.f32.vlgmr.msra.gmra.mxu0 %vm72_vm0, %v2144_v57  ;;  %v2120_v62 = vsel %vm1649_vm3, %v2117_v50, %v2119_v58  ;;  %v2122_v0 = vsel %vm1649_vm3, %v2119_v58, %v2121_v10 }
 0x380   :  { %3020 = vmatprep.mubr.msk.f32.mxu1 %vm72_vm0, %v2118_v60  ;;  %3037 = vmatprep.mubr.msk.f32.mxu0 %vm72_vm0, %v2146_v61 }
 0x383   :  { %3021 = vmatmul.mubr.msk.f32.gmra.mxu1 %vm72_vm0, %v2120_v62  ;;  %3038 = vmatmul.mubr.msk.f32.gmra.mxu0 %vm72_vm0, %v2148_v63 }
 0x384   :  { %3023 = vmatprep.mubr.msk.f32.mxu1 %vm72_vm0, %v2122_v0  ;;  %3040 = vmatprep.mubr.msk.f32.mxu0 %vm72_vm0, %v2149_v1 }
 0x387   :  { %3024 = vmatmul.mubr.msk.f32.gmra.mxu1 %vm72_vm0, %v2121_v10  ;;  %3041 = vmatmul.mubr.msk.f32.gmra.mxu0 %vm72_vm0, %v2161_v2 }
 0x433   :  { %v3002_v3 = vpop.f32.mrf.mxu0 }
 0x435   :  { %v2249_v4 = vpop.f32.mrf.mxu0 }
 0x437   :  { %v3005_v5 = vpop.f32.mrf.mxu0 }
 0x439   :  { %v2259_v6 = vpop.f32.mrf.mxu0 }
 0x43b   :  { %v3008_v7 = vpop.f32.mrf.mxu0 }
 0x43d   :  { %v2269_v8 = vpop.f32.mrf.mxu0 }
 0x43f   :  { %v3019_v9 = vpop.f32.mrf.mxu1  ;;  %v3036_v11 = vpop.f32.mrf.mxu0 }
 0x440   :  { %v2368_v12 = vadd.f32 %v3019_v9, %v3002_v3 }
 0x441   :  { %v2362_v14 = vpop.f32.mrf.mxu1  ;;  %v2479_v15 = vpop.f32.mrf.mxu0 }
 0x442   :  { %v2509_v16 = vadd.f32 %v3036_v11, %v2368_v12  ;;  %v2363_v17 = vadd.f32 %v2362_v14, %v2249_v4 }
 0x443   :  { %v3022_v18 = vpop.f32.mrf.mxu1  ;;  %v3039_v28 = vpop.f32.mrf.mxu0 }
 0x444   :  { %v2508_v19 = vadd.f32 %v2479_v15, %v2363_v17  ;;  %v2378_v20 = vadd.f32 %v3022_v18, %v3005_v5  ;;  %v2520_v21 = vadd.f32 %v2822_v24, %v2509_v16 }
 0x445   :  { %v2372_v22 = vpop.f32.mrf.mxu1  ;;  %v2489_v23 = vpop.f32.mrf.mxu0 }
 0x446   :  { %v2511_v26 = vadd.f32 %v3039_v28, %v2378_v20  ;;  %v2373_v27 = vadd.f32 %v2372_v22, %v2259_v6  ;;  %v2529_v29 = vsel %vm2525_vm7, %v2520_v21, -inf  ;;  %v2519_v30 = vadd.f32 %v2822_v24, %v2508_v19 }
 0x447   :  { %2530 = vmax.xlane.f32.xlu0 %v2529_v29  ;;  %v3025_v31 = vpop.f32.mrf.mxu1  ;;  %v3042_v32 = vpop.f32.mrf.mxu0 }
 0x448   :  { %v2510_v33 = vadd.f32 %v2489_v23, %v2373_v27  ;;  %v2388_v34 = vadd.f32 %v3025_v31, %v3008_v7  ;;  %v2526_v35 = vsel %vm2525_vm7, %v2519_v30, -inf  ;;  %v2522_v36 = vadd.f32 %v2822_v24, %v2511_v26 }
 0x449   :  { %2527 = vmax.xlane.f32.xlu1 %v2526_v35  ;;  %v2382_v37 = vpop.f32.mrf.mxu1  ;;  %v2499_v38 = vpop.f32.mrf.mxu0 }
 0x44a   :  { %v2513_v39 = vadd.f32 %v3042_v32, %v2388_v34  ;;  %v2383_v40 = vadd.f32 %v2382_v37, %v2269_v8  ;;  %v2521_v41 = vadd.f32 %v2822_v24, %v2510_v33  ;;  %v2535_v43 = vsel %vm2525_vm7, %v2522_v36, -inf }
 0x44c   :  { %v2512_v42 = vadd.f32 %v2499_v38, %v2383_v40  ;;  %v2532_v44 = vsel %vm2525_vm7, %v2521_v41, -inf  ;;  %v2524_v45 = vadd.f32 %v2822_v24, %v2513_v39 }
 0x44d   :  { %2536 = vmax.xlane.f32.xlu1 %v2535_v43  ;;  %2533 = vmax.xlane.f32.xlu0 %v2532_v44 }
 0x44e   :  { %v2523_v25 = vadd.f32 %v2822_v24, %v2512_v42  ;;  %v2542_v46 = vsel %vm2541_vm8, %v2524_v45, -inf }
 0x450   :  { %v2538_v47 = vsel %vm2525_vm7, %v2523_v25, -inf }
 0x451   :  { %2543 = vmax.xlane.f32.xlu1 %v2542_v46  ;;  %2539 = vmax.xlane.f32.xlu0 %v2538_v47 }
 0x4d0   :  { %v2531_v48 = vpop.xlane.xlu0 %2530 }
 0x4d1   :  { %v2546_v49 = vsub.f32 %v2520_v21, %v2531_v48 }
 0x4d2   :  { %v2528_v13 = vpop.xlane.xlu1 %2527 }
 0x4d3   :  { %v2553_v50 = vmul.f32 1.442695, %v2546_v49  ;;  %v2545_v51 = vsub.f32 %v2519_v30, %v2528_v13 }
 0x4d5   :  { %3310 = vpow2.f32 %v2553_v50  ;;  %v2551_v52 = vmul.f32 1.442695, %v2545_v51 }
 0x4d6   :  { %v2537_v53 = vpop.xlane.xlu1 %2536  ;;  %v2534_v54 = vpop.xlane.xlu0 %2533 }
 0x4d7   :  { %3312 = vpow2.f32 %v2551_v52  ;;  %v2548_v55 = vsub.f32 %v2522_v36, %v2537_v53  ;;  %v2547_v56 = vsub.f32 %v2521_v41, %v2534_v54 }
 0x4d9   :  { %v2557_v57 = vmul.f32 1.442695, %v2548_v55  ;;  %v2555_v58 = vmul.f32 1.442695, %v2547_v56 }
 0x4da   :  { %v2544_v59 = vpop.xlane.xlu1 %2543  ;;  %v2540_v60 = vpop.xlane.xlu0 %2539 }
 0x4db   :  { %3314 = vpow2.f32 %v2557_v57  ;;  %v2550_v61 = vsub.f32 %v2524_v45, %v2544_v59  ;;  %v2549_v10 = vsub.f32 %v2523_v25, %v2540_v60 }
 0x4dc   :  { %3316 = vpow2.f32 %v2555_v58 }
 0x4dd   :  { %v2561_v62 = vmul.f32 1.442695, %v2550_v61  ;;  %v2559_v63 = vmul.f32 1.442695, %v2549_v10 }
 0x4df   :  { %3318 = vpow2.f32 %v2561_v62 }
 0x4e0   :  { %3320 = vpow2.f32 %v2559_v63 }
 0x4e2   :  { %v3311_v0 = vpop.eup %3310 }
 0x4e3   :  { %v2566_v1 = vsel %vm2525_vm7, %v3311_v0, 0.0 }
 0x4e4   :  { %v3313_v2 = vpop.eup %3312  ;;  %2567 = vadd.xlane.f32.xlu1 %v2566_v1 }
 0x4e5   :  { %v2563_v3 = vsel %vm2525_vm7, %v3313_v2, 0.0 }
 0x4e6   :  { %2564 = vadd.xlane.f32.xlu0 %v2563_v3 }
 0x4e8   :  { %v3315_v4 = vpop.eup %3314 }
 0x4e9   :  { %v3317_v5 = vpop.eup %3316  ;;  %v2572_v6 = vsel %vm2525_vm7, %v3315_v4, 0.0 }
 0x4ea   :  { %2573 = vadd.xlane.f32.xlu1 %v2572_v6  ;;  %v2569_v7 = vsel %vm2525_vm7, %v3317_v5, 0.0 }
 0x4eb   :  { %2570 = vadd.xlane.f32.xlu0 %v2569_v7 }
 0x4ec   :  { %v3319_v8 = vpop.eup %3318 }
 0x4ed   :  { %v3321_v9 = vpop.eup %3320  ;;  %v2578_v11 = vsel %vm2541_vm8, %v3319_v8, 0.0 }
 0x4ee   :  { %2579 = vadd.xlane.f32.xlu1 %v2578_v11  ;;  %v2575_v12 = vsel %vm2525_vm7, %v3321_v9, 0.0 }
 0x4ef   :  { %2576 = vadd.xlane.f32.xlu0 %v2575_v12 }
 0x56d   :  { %v2568_v14 = vpop.xlane.xlu1 %2567 }
 0x56e   :  { %3322 = vrcp.f32 %v2568_v14 }
 0x56f   :  { %v2565_v15 = vpop.xlane.xlu0 %2564 }
 0x570   :  { %3324 = vrcp.f32 %v2565_v15 }
 0x573   :  { %v2574_v24 = vpop.xlane.xlu1 %2573 }
 0x574   :  { %3326 = vrcp.f32 %v2574_v24  ;;  %v2571_v16 = vpop.xlane.xlu0 %2570 }
 0x575   :  { %3328 = vrcp.f32 %v2571_v16 }
 0x577   :  { %v2580_v17 = vpop.xlane.xlu1 %2579 }
 0x578   :  { %3330 = vrcp.f32 %v2580_v17  ;;  %v2577_v18 = vpop.xlane.xlu0 %2576 }
 0x579   :  { %3332 = vrcp.f32 %v2577_v18 }
 0x57b   :  { %v3323_v28 = vpop.eup %3322 }
 0x57c   :  { %v2588_v19 = vmul.f32 %v3323_v28, %v3311_v0 }
 0x57d   :  { %v3325_v20 = vpop.eup %3324 }
 0x57e   :  { %2594 = vst.msk [vmem:[%s3730_s5 + $0x8] sm:$0xff] %vm2525_vm7, %v2588_v19  ;;  %v2587_v21 = vmul.f32 %v3325_v20, %v3313_v2 }
 0x580   :  { %2593 = vst.msk [vmem:[%s3730_s5] sm:$0xff] %vm2525_vm7, %v2587_v21 }
 0x581   :  { %v3327_v22 = vpop.eup %3326 }
 0x582   :  { %v3329_v23 = vpop.eup %3328  ;;  %v2590_v26 = vmul.f32 %v3327_v22, %v3315_v4 }
 0x583   :  { %v2589_v27 = vmul.f32 %v3329_v23, %v3317_v5 }
 0x584   :  { %2596 = vst.msk [vmem:[%s3730_s5 + $0x18] sm:$0xff] %vm2525_vm7, %v2590_v26 }
 0x585   :  { %v3331_v29 = vpop.eup %3330  ;;  %2595 = vst.msk [vmem:[%s3730_s5 + $0x10] sm:$0xff] %vm2525_vm7, %v2589_v27 }
 0x586   :  { %v3333_v30 = vpop.eup %3332  ;;  %v2592_v31 = vmul.f32 %v3331_v29, %v3319_v8 }
 0x587   :  { %v2591_v32 = vmul.f32 %v3333_v30, %v3321_v9 }
 0x588   :  { %2598 = vst.msk [vmem:[%s3730_s5 + $0x28] sm:$0xf] %vm2541_vm8, %v2592_v31 }
 0x589   :  { %2597 = vst.msk [vmem:[%s3730_s5 + $0x20] sm:$0xff] %vm2525_vm7, %v2591_v32 }
 0x58a   :  { %2603 = vsyncpa [#allocation4], 1 }

</bundles_post_ra>
